<compile_context>
chip_gen: v5e
topology: v5e:2x2
jax: 0.10.0
libtpu: 0.0.40
codegen_flags: <defaults>
</compile_context>

<pallas_src>
import math
from functools import partial

import jax
import jax.numpy as jnp
from jax.experimental import pallas as pl
from jax.experimental.pallas import tpu as pltpu

# (dr, dc) offsets of the 9 taps of a stride-1, pad-1 3x3 conv, row-major in
# (kh, kw) order -> matches the PyTorch weight layout.
_TAPS = [(dr, dc) for dr in (-1, 0, 1) for dc in (-1, 0, 1)]
_VMEM_LIMIT = 32 * 1024 * 1024


def _make_tap_masks(H, W, B):
    """(9, B*H*W) f32 validity masks, one per 3x3 tap, tiled over the batch.

    Zero wherever a tap would read the (zero) padding of its image; because
    the kernels roll over the whole B*H*W lane axis, the same masks also
    neutralise every cross-batch / wraparound read.  Only valid for
    3x3 / stride-1 / pad-1 convolutions.
    """
    row = jnp.arange(H, dtype=jnp.int32)[:, None]
    col = jnp.arange(W, dtype=jnp.int32)[None, :]
    masks = []
    for dr, dc in _TAPS:
        m = ((row + dr >= 0) & (row + dr < H) &
             (col + dc >= 0) & (col + dc < W))
        masks.append(m.reshape(H * W))
    masks = jnp.stack(masks).astype(jnp.float32)          # (9, L)
    return jnp.tile(masks, (1, B))                        # (9, B*L)


def _tap_shifts(H, W, lane_len):
    """Lane-roll amount per tap so rolled[p] == x[p + dr*W + dc]."""
    return tuple((-(dr * W + dc)) % lane_len for dr, dc in _TAPS)


# ---------------------------------------------------------------------------
# Kernel 1: dense 3x3 conv (conv1), batch collapsed, taps stacked -> 1 matmul
# ---------------------------------------------------------------------------
def _conv3x3_kernel(x_ref, w_ref, m_ref, o_ref, *, shifts):
    x = x_ref[...]                                         # (Cin_p, B*L)
    masks = m_ref[...]                                     # (9, B*L)
    taps = []
    for t in range(9):
        xt = x if shifts[t] == 0 else pltpu.roll(x, shift=shifts[t], axis=1)
        taps.append(xt * masks[t:t + 1, :])
    stacked = jnp.concatenate(taps, axis=0)                # (9*Cin_p, B*L)
    o_ref[...] = jnp.dot(w_ref[...], stacked,
                         preferred_element_type=jnp.float32)


def conv3x3_collapsed(x_cb, w, masks, H, W):
    """x_cb: (Cin, B*L) channel-major (batch on lanes); w: (Cout, Cin, 3, 3)."""
    Cin, BL = x_cb.shape
    Cout = w.shape[0]
    Cin_p = ((Cin + 7) // 8) * 8                           # sublane alignment
    if Cin_p != Cin:
        x_cb = jnp.pad(x_cb, ((0, Cin_p - Cin), (0, 0)))
        w = jnp.pad(w, ((0, 0), (0, Cin_p - Cin), (0, 0), (0, 0)))
    # (Cout, Cin_p, 3, 3) -> (Cout, 9*Cin_p), tap-major to match the concat.
    w_flat = jnp.transpose(w, (0, 2, 3, 1)).reshape(Cout, 9 * Cin_p)
    shifts = _tap_shifts(H, W, BL)
    return pl.pallas_call(
        partial(_conv3x3_kernel, shifts=shifts),
        out_shape=jax.ShapeDtypeStruct((Cout, BL), jnp.float32),
        grid=(1,),
        in_specs=[
            pl.BlockSpec((Cin_p, BL), lambda i: (0, 0)),
            pl.BlockSpec((Cout, 9 * Cin_p), lambda i: (0, 0)),
            pl.BlockSpec((9, BL), lambda i: (0, 0)),
        ],
        out_specs=pl.BlockSpec((Cout, BL), lambda i: (0, 0)),
        compiler_params=pltpu.CompilerParams(
            dimension_semantics=("arbitrary",),
            vmem_limit_bytes=_VMEM_LIMIT),
    )(x_cb.astype(jnp.float32), w_flat.astype(jnp.float32), masks)


# ---------------------------------------------------------------------------
# Kernel 2: conv2 (1x1) + full CrossAttention, fused; grid=(2,) over branches
# ---------------------------------------------------------------------------
def _conv2_cross_attention_kernel(
        f_ref, y_ref, m_ref, gm_ref,
        c2w_ref, c2b_ref,
        qw_ref, qb_ref, qdww_ref, qdwb_ref,
        kvw_ref, kvb_ref, kvdww_ref, kvdwb_ref,
        pw_ref, pb_ref, trow_ref,
        o_ref, qkv_ref,
        *, shifts, batch, spatial):
    f = f_ref[0]                                           # (dim,  B*L)
    y = y_ref[0]                                           # (cdim, B*L)
    masks = m_ref[...]                                     # (9, B*L)
    cdim = y.shape[0]
    B, L = batch, spatial

    def dwconv(z, w9, bias):
        # depthwise 3x3 / stride 1 / pad 1 (padding handled by the tap masks)
        acc = jnp.zeros_like(z)
        for t in range(9):
            zt = z if shifts[t] == 0 else pltpu.roll(z, shift=shifts[t], axis=1)
            acc = acc + zt * masks[t:t + 1, :] * w9[:, t:t + 1]
        return acc + bias

    # conv2_* (1x1, dim -> cdim) fused in: intermediate never leaves VMEM.
    x2 = jnp.dot(c2w_ref[0], f, preferred_element_type=jnp.float32) + c2b_ref[0]

    q = dwconv(jnp.dot(qw_ref[0], x2, preferred_element_type=jnp.float32)
               + qb_ref[0], qdww_ref[0], qdwb_ref[0])      # (cdim, B*L)
    kv = dwconv(jnp.dot(kvw_ref[0], y, preferred_element_type=jnp.float32)
                + kvb_ref[0], kvdww_ref[0], kvdwb_ref[0])  # (2cdim, B*L)
    k = kv[:cdim, :]
    v = kv[cdim:, :]

    # Re-stack batch from lanes onto sublanes (rows ordered (b, head, c)) so
    # every (batch, head) attention matmul runs in one full-sublane MXU push.
    for b in range(B):
        rows = slice(b * cdim, (b + 1) * cdim)
        cols = slice(b * L, (b + 1) * L)
        qkv_ref[0, rows, :] = q[:, cols]
        qkv_ref[1, rows, :] = k[:, cols]
        qkv_ref[2, rows, :] = v[:, cols]
    qs = qkv_ref[0]                                        # (B*cdim, L)
    ks = qkv_ref[1]
    vs = qkv_ref[2]

    eps = jnp.float32(1e-12)

    def l2norm(z):                                         # F.normalize(dim=-1)
        ss = jnp.sum(z * z, axis=-1, keepdims=True)
        return z * jax.lax.rsqrt(jnp.maximum(ss, eps * eps))

    qn = l2norm(qs)
    kn = l2norm(ks)

    # One (R, L) x (L, R) matmul covers every (batch, head) block; cross-group
    # entries are masked off before the (exact) softmax.
    scores = jax.lax.dot_general(qn, kn, (((1,), (1,)), ((), ())),
                                 preferred_element_type=jnp.float32)  # (R, R)
    scores = scores * trow_ref[0]                          # per-row temperature
    scores = jnp.where(gm_ref[...] > 0.0, scores, jnp.float32(-1e30))
    scores = scores - jnp.max(scores, axis=-1, keepdims=True)
    p = jnp.exp(scores)
    p = p / jnp.sum(p, axis=-1, keepdims=True)             # exact softmax
    av = jnp.dot(p, vs, preferred_element_type=jnp.float32)  # (R, L)

    # 1x1 projection, stored straight into the lane-dense output.
    for b in range(B):
        ob = jnp.dot(pw_ref[0], av[b * cdim:(b + 1) * cdim, :],
                     preferred_element_type=jnp.float32) + pb_ref[0]
        o_ref[0, :, b * L:(b + 1) * L] = ob


def fused_conv2_cross_attention(f_pair, s_pair, masks, stacked, B, H, W):
    """f_pair: (2, dim, B*L); s_pair: (2, cdim, B*L); returns (2, cdim, B*L)."""
    S, dim, BL = f_pair.shape
    cdim = s_pair.shape[1]
    L = H * W
    R = B * cdim
    shifts = _tap_shifts(H, W, BL)

    def full(shape):
        return pl.BlockSpec(shape, lambda s: (0,) * len(shape))

    def branch(shape):
        return pl.BlockSpec((1,) + shape, lambda s: (s,) + (0,) * len(shape))

    return pl.pallas_call(
        partial(_conv2_cross_attention_kernel,
                shifts=shifts, batch=B, spatial=L),
        out_shape=jax.ShapeDtypeStruct((S, cdim, BL), jnp.float32),
        grid=(S,),
        in_specs=[
            branch((dim, BL)),                                  # f (branch feat)
            branch((cdim, BL)),                                 # s (y)
            full((9, BL)),                                      # tap masks
            full((R, R)),                                       # attn group mask
            branch((cdim, dim)), branch((cdim, 1)),             # conv2
            branch((cdim, cdim)), branch((cdim, 1)),            # q 1x1
            branch((cdim, 9)), branch((cdim, 1)),               # q dwconv
            branch((2 * cdim, cdim)), branch((2 * cdim, 1)),    # kv 1x1
            branch((2 * cdim, 9)), branch((2 * cdim, 1)),       # kv dwconv
            branch((cdim, cdim)), branch((cdim, 1)),            # proj
            branch((R, 1)),                                     # temperature/row
        ],
        out_specs=branch((cdim, BL)),
        scratch_shapes=[pltpu.VMEM((3, R, L), jnp.float32)],
        compiler_params=pltpu.CompilerParams(
            dimension_semantics=("parallel",),
            vmem_limit_bytes=_VMEM_LIMIT),
    )(f_pair, s_pair, masks, stacked["gmask"],
      stacked["c2_w"], stacked["c2_b"],
      stacked["q_w"], stacked["q_b"], stacked["q_dw_w"], stacked["q_dw_b"],
      stacked["kv_w"], stacked["kv_b"], stacked["kv_dw_w"], stacked["kv_dw_b"],
      stacked["proj_w"], stacked["proj_b"], stacked["temp_row"])


def _stack_ca_params(params, B, num_heads):
    """Stack the two CrossAttention branches (branch order: high, low)."""
    cdim = params["CA_low"]["q_w"].shape[0]
    cph = cdim // num_heads
    R = B * cdim

    def stk(name):
        return jnp.stack([params["CA_low"][name],
                          params["CA_high"][name]]).astype(jnp.float32)

    def col(name, rows):
        return stk(name).reshape(2, rows, 1)

    def dw(name, rows):
        return jnp.stack([params["CA_low"][name][:, 0],
                          params["CA_high"][name][:, 0]]
                         ).astype(jnp.float32).reshape(2, rows, 9)

    temp = jnp.stack([params["CA_low"]["temperature"],
                      params["CA_high"]["temperature"]]
                     ).astype(jnp.float32).reshape(2, num_heads)
    temp_row = jnp.tile(jnp.repeat(temp, cph, axis=1), (1, B)).reshape(2, R, 1)
    grp = jnp.arange(R, dtype=jnp.int32) // cph             # (batch, head) group
    gmask = (grp[:, None] == grp[None, :]).astype(jnp.float32)

    return {
        "c2_w": jnp.stack([params["conv2_1_w"],
                           params["conv2_2_w"]]).astype(jnp.float32),
        "c2_b": jnp.stack([params["conv2_1_b"],
                           params["conv2_2_b"]]).astype(jnp.float32
                                                        ).reshape(2, cdim, 1),
        "q_w": stk("q_w"), "q_b": col("q_b", cdim),
        "q_dw_w": dw("q_dw_w", cdim), "q_dw_b": col("q_dw_b", cdim),
        "kv_w": stk("kv_w"), "kv_b": col("kv_b", 2 * cdim),
        "kv_dw_w": dw("kv_dw_w", 2 * cdim), "kv_dw_b": col("kv_dw_b", 2 * cdim),
        "proj_w": stk("proj_w"), "proj_b": col("proj_b", cdim),
        "temp_row": temp_row, "gmask": gmask,
    }


# ---------------------------------------------------------------------------
# Frequency split (plain JAX / XLA FFT), single inverse FFT
# ---------------------------------------------------------------------------
def fft_split(feat, blended_h, blended_w):
    """AFSIModule.fft() split. The centered box in fftshift coordinates maps
    to [0,h_) U [H-h_,H) unshifted, so shift/unshift rolls are folded away;
    and since ifft2(fft*(1-mask)) == x - ifft2(fft*mask) for real x, only one
    inverse FFT is needed."""
    # TODO(synk): FFT/IFFT have no Pallas TPU primitive; this stays on XLA's FFT.
    B, C, H, W = feat.shape
    h_ = jnp.round((H // 2) * blended_h).astype(jnp.int32)  # (B,)
    w_ = jnp.round((W // 2) * blended_w).astype(jnp.int32)
    rows = jnp.arange(H)
    cols = jnp.arange(W)
    rmask = (rows[None, :] < h_[:, None]) | (rows[None, :] >= H - h_[:, None])
    cmask = (cols[None, :] < w_[:, None]) | (cols[None, :] >= W - w_[:, None])
    mask = rmask[:, None, :, None] & cmask[:, None, None, :]      # (B,1,H,W)
    fft = jnp.fft.fft2(feat, norm="forward")
    low_c = jnp.fft.ifft2(fft * mask.astype(fft.dtype), norm="forward")
    low = jnp.abs(low_c).astype(jnp.float32)
    high = jnp.abs(feat - low_c).astype(jnp.float32)
    return high, low


# ---------------------------------------------------------------------------
# AFSIModule forward
# ---------------------------------------------------------------------------
def afsi_forward(params, s_high, s_low, image, x, num_heads):
    del x  # unused by the reference forward
    B, Cin, H, W = image.shape
    L = H * W
    BL = B * L
    dim = params["conv1_w"].shape[0]
    cdim = dim // 2

    masks = _make_tap_masks(H, W, B)                       # shared by both kernels

    # conv1 (3x3): batch collapsed onto lanes, 9 taps stacked into one matmul.
    img_cb = jnp.transpose(image, (1, 0, 2, 3)).reshape(Cin, BL).astype(jnp.float32)
    feat_cb = conv3x3_collapsed(img_cb, params["conv1_w"], masks, H, W)  # (dim, BL)
    feat = jnp.transpose(feat_cb.reshape(dim, B, H, W), (1, 0, 2, 3))    # (B,dim,H,W)

    # rate path: adaptive_avg_pool2d -> 1x1 -> GELU -> 1x1 -> sigmoid.
    # (B, dim) with dim ~ 8: a Pallas launch would be pure overhead.
    pooled = jnp.mean(feat, axis=(2, 3))                   # (B, dim)
    t = jax.nn.gelu(pooled @ params["rate_w1"].T, approximate=False)
    thr = jax.nn.sigmoid(t @ params["rate_w2"].T)          # (B, 2)
    blended_h = params["alpha_h"] * thr[:, 0] + (1.0 - params["alpha_h"]) * thr[:, 1]
    blended_w = params["alpha_w"] * thr[:, 0] + (1.0 - params["alpha_w"]) * thr[:, 1]

    f_high, f_low = fft_split(feat, blended_h, blended_w)  # (B, dim, H, W) each

    def to_cb(z):  # (B, C, H, W) -> (C, B*L) channel-major, lane-dense
        return jnp.transpose(z, (1, 0, 2, 3)).reshape(z.shape[1], BL).astype(jnp.float32)

    # NOTE: the PyTorch reference really applies CA_low to the high branch and
    # CA_high to the low branch — branch order here is (high, low).
    f_pair = jnp.stack([to_cb(f_high), to_cb(f_low)])      # (2, dim, BL)
    s_pair = jnp.stack([to_cb(s_high), to_cb(s_low)])      # (2, cdim, BL)

    stacked = _stack_ca_params(params, B, num_heads)
    out_pair = fused_conv2_cross_attention(f_pair, s_pair, masks, stacked, B, H, W)

    def from_cb(z):  # (cdim, B*L) -> (B, cdim, H, W)
        return jnp.transpose(z.reshape(cdim, B, H, W), (1, 0, 2, 3))

    return from_cb(out_pair[0]), from_cb(out_pair[1])


# ---------------------------------------------------------------------------
# Deterministic parameter initialization (shapes follow AFSIModule.__init__)
# ---------------------------------------------------------------------------
def get_reduction_dim(dim):
    if dim < 8:
        return max(2, dim)
    log_dim = math.log2(dim)
    return max(2, int(dim // log_dim))


def init_params(key, dim, num_heads, in_dim):
    rdim = get_reduction_dim(dim)
    cdim = dim // 2
    keys = iter(jax.random.split(key, 32))
    n = lambda shape, s=0.1: jax.random.normal(next(keys), shape, jnp.float32) * s

    def ca_params():
        return {
            "temperature": jnp.ones((num_heads, 1, 1), jnp.float32),
            "q_w": n((cdim, cdim)), "q_b": n((cdim,)),
            "q_dw_w": n((cdim, 1, 3, 3)), "q_dw_b": n((cdim,)),
            "kv_w": n((2 * cdim, cdim)), "kv_b": n((2 * cdim,)),
            "kv_dw_w": n((2 * cdim, 1, 3, 3)), "kv_dw_b": n((2 * cdim,)),
            "proj_w": n((cdim, cdim)), "proj_b": n((cdim,)),
        }

    return {
        "conv1_w": n((dim, in_dim, 3, 3)),
        "rate_w1": n((rdim, dim)),
        "rate_w2": n((2, rdim)),
        "alpha_h": jnp.float32(0.5),
        "alpha_w": jnp.float32(0.5),
        "conv2_1_w": n((cdim, dim)), "conv2_1_b": n((cdim,)),
        "conv2_2_w": n((cdim, dim)), "conv2_2_b": n((cdim,)),
        "CA_low": ca_params(),
        "CA_high": ca_params(),
    }


if __name__ == "__main__":
    dim, num_heads, in_dim = 8, 2, 3
    B, H, W = 2, 16, 16
    key = jax.random.PRNGKey(0)
    kp, k1, k2, k3, k4 = jax.random.split(key, 5)
    params = init_params(kp, dim, num_heads, in_dim)
    s_high = jax.random.normal(k1, (B, dim // 2, H, W), jnp.float32)
    s_low = jax.random.normal(k2, (B, dim // 2, H, W), jnp.float32)
    image = jax.random.normal(k3, (B, in_dim, H, W), jnp.float32)
    x_unused = jax.random.normal(k4, (B, dim // 2, H, W), jnp.float32)

    fwd = jax.jit(partial(afsi_forward, num_heads=num_heads))
    high_feature, low_feature = fwd(params, s_high, s_low, image, x_unused)
    jax.block_until_ready((high_feature, low_feature))
    assert high_feature.shape == (B, dim // 2, H, W)
    assert low_feature.shape == (B, dim // 2, H, W)
    assert bool(jnp.all(jnp.isfinite(high_feature))) and bool(jnp.all(jnp.isfinite(low_feature)))
    print("KERNEL_OK")
</pallas_src>

<mosaic_0001>
module attributes {stable_mosaic.version = 11 : i64} {
  func.func @_conv3x3_kernel(%arg0: i32, %arg1: memref<8x512xf32, #tpu.memory_space<vmem>>, %arg2: memref<8x72xf32, #tpu.memory_space<vmem>>, %arg3: memref<9x512xf32, #tpu.memory_space<vmem>>, %arg4: memref<8x512xf32, #tpu.memory_space<vmem>>) attributes {dimension_semantics = [#tpu.dimension_semantics<arbitrary>], iteration_bounds = array<i64: 1>, scalar_prefetch = 0 : i64, scratch_operands = 0 : i64, tpu.core_type = #tpu.core_type<tc>, window_params = [{pipeline_mode = #tpu.pipeline_mode<synchronous>, transform_indices = @transform_0, window_bounds = array<i64: 8, 512>}, {pipeline_mode = #tpu.pipeline_mode<synchronous>, transform_indices = @transform_1, window_bounds = array<i64: 8, 72>}, {pipeline_mode = #tpu.pipeline_mode<synchronous>, transform_indices = @transform_2, window_bounds = array<i64: 9, 512>}, {pipeline_mode = #tpu.pipeline_mode<synchronous>, transform_indices = @transform_3, window_bounds = array<i64: 8, 512>}]} {
    %c0 = arith.constant 0 : index
    %c0_0 = arith.constant 0 : index
    %0 = vector.load %arg1[%c0, %c0_0] : memref<8x512xf32, #tpu.memory_space<vmem>>, vector<8x512xf32>
    %c0_1 = arith.constant 0 : index
    %c0_2 = arith.constant 0 : index
    %1 = vector.load %arg3[%c0_1, %c0_2] : memref<9x512xf32, #tpu.memory_space<vmem>>, vector<9x512xf32>
    %c17_i32 = arith.constant 17 : i32
    %2 = tpu.dynamic_rotate %0 by %c17_i32 dim 1 : vector<8x512xf32>, i32 -> vector<8x512xf32>
    %3 = vector.extract_strided_slice %1 {offsets = [0, 0], sizes = [1, 512], strides = [1, 1]} : vector<9x512xf32> to vector<1x512xf32>
    %4 = vector.broadcast %3 : vector<1x512xf32> to vector<8x512xf32>
    %5 = arith.mulf %2, %4 : vector<8x512xf32>
    %c16_i32 = arith.constant 16 : i32
    %6 = tpu.dynamic_rotate %0 by %c16_i32 dim 1 : vector<8x512xf32>, i32 -> vector<8x512xf32>
    %7 = vector.extract_strided_slice %1 {offsets = [1, 0], sizes = [1, 512], strides = [1, 1]} : vector<9x512xf32> to vector<1x512xf32>
    %8 = vector.broadcast %7 : vector<1x512xf32> to vector<8x512xf32>
    %9 = arith.mulf %6, %8 : vector<8x512xf32>
    %c15_i32 = arith.constant 15 : i32
    %10 = tpu.dynamic_rotate %0 by %c15_i32 dim 1 : vector<8x512xf32>, i32 -> vector<8x512xf32>
    %11 = vector.extract_strided_slice %1 {offsets = [2, 0], sizes = [1, 512], strides = [1, 1]} : vector<9x512xf32> to vector<1x512xf32>
    %12 = vector.broadcast %11 : vector<1x512xf32> to vector<8x512xf32>
    %13 = arith.mulf %10, %12 : vector<8x512xf32>
    %c1_i32 = arith.constant 1 : i32
    %14 = tpu.dynamic_rotate %0 by %c1_i32 dim 1 : vector<8x512xf32>, i32 -> vector<8x512xf32>
    %15 = vector.extract_strided_slice %1 {offsets = [3, 0], sizes = [1, 512], strides = [1, 1]} : vector<9x512xf32> to vector<1x512xf32>
    %16 = vector.broadcast %15 : vector<1x512xf32> to vector<8x512xf32>
    %17 = arith.mulf %14, %16 : vector<8x512xf32>
    %18 = vector.extract_strided_slice %1 {offsets = [4, 0], sizes = [1, 512], strides = [1, 1]} : vector<9x512xf32> to vector<1x512xf32>
    %19 = vector.broadcast %18 : vector<1x512xf32> to vector<8x512xf32>
    %20 = arith.mulf %0, %19 : vector<8x512xf32>
    %c511_i32 = arith.constant 511 : i32
    %21 = tpu.dynamic_rotate %0 by %c511_i32 dim 1 : vector<8x512xf32>, i32 -> vector<8x512xf32>
    %22 = vector.extract_strided_slice %1 {offsets = [5, 0], sizes = [1, 512], strides = [1, 1]} : vector<9x512xf32> to vector<1x512xf32>
    %23 = vector.broadcast %22 : vector<1x512xf32> to vector<8x512xf32>
    %24 = arith.mulf %21, %23 : vector<8x512xf32>
    %c497_i32 = arith.constant 497 : i32
    %25 = tpu.dynamic_rotate %0 by %c497_i32 dim 1 : vector<8x512xf32>, i32 -> vector<8x512xf32>
    %26 = vector.extract_strided_slice %1 {offsets = [6, 0], sizes = [1, 512], strides = [1, 1]} : vector<9x512xf32> to vector<1x512xf32>
    %27 = vector.broadcast %26 : vector<1x512xf32> to vector<8x512xf32>
    %28 = arith.mulf %25, %27 : vector<8x512xf32>
    %c496_i32 = arith.constant 496 : i32
    %29 = tpu.dynamic_rotate %0 by %c496_i32 dim 1 : vector<8x512xf32>, i32 -> vector<8x512xf32>
    %30 = vector.extract_strided_slice %1 {offsets = [7, 0], sizes = [1, 512], strides = [1, 1]} : vector<9x512xf32> to vector<1x512xf32>
    %31 = vector.broadcast %30 : vector<1x512xf32> to vector<8x512xf32>
    %32 = arith.mulf %29, %31 : vector<8x512xf32>
    %c495_i32 = arith.constant 495 : i32
    %33 = tpu.dynamic_rotate %0 by %c495_i32 dim 1 : vector<8x512xf32>, i32 -> vector<8x512xf32>
    %34 = vector.extract_strided_slice %1 {offsets = [8, 0], sizes = [1, 512], strides = [1, 1]} : vector<9x512xf32> to vector<1x512xf32>
    %35 = vector.broadcast %34 : vector<1x512xf32> to vector<8x512xf32>
    %36 = arith.mulf %33, %35 : vector<8x512xf32>
    %37 = tpu.concatenate %5, %9, %13, %17, %20, %24, %28, %32, %36 in 0 : vector<8x512xf32>, vector<8x512xf32>, vector<8x512xf32>, vector<8x512xf32>, vector<8x512xf32>, vector<8x512xf32>, vector<8x512xf32>, vector<8x512xf32>, vector<8x512xf32> -> vector<72x512xf32>
    %c0_3 = arith.constant 0 : index
    %c0_4 = arith.constant 0 : index
    %38 = vector.load %arg2[%c0_3, %c0_4] : memref<8x72xf32, #tpu.memory_space<vmem>>, vector<8x72xf32>
    %cst = arith.constant dense<0.000000e+00> : vector<8x512xf32>
    %39 = tpu.matmul %38, %37, %cst {dimension_numbers = #tpu.dot_dimension_numbers<[1], [0], [0], [1], [0, 0, 1, 1], [], []>} : vector<8x72xf32>, vector<72x512xf32>, vector<8x512xf32> -> vector<8x512xf32>
    %c0_5 = arith.constant 0 : index
    %c0_6 = arith.constant 0 : index
    %40 = vector.load %arg4[%c0_5, %c0_6] : memref<8x512xf32, #tpu.memory_space<vmem>>, vector<8x512xf32>
    tpu.vector_store %arg4[%c0_5, %c0_6], %39 {strides = array<i32>} : memref<8x512xf32, #tpu.memory_space<vmem>>, vector<8x512xf32>,
    return
  }
  func.func @transform_0(%arg0: i32) -> (i32, i32) {
    %c0_i32 = arith.constant 0 : i32
    %c0_i32_0 = arith.constant 0 : i32
    %c0_i32_1 = arith.constant 0 : i32
    return %c0_i32, %c0_i32_0 : i32, i32
  }
  func.func @transform_1(%arg0: i32) -> (i32, i32) {
    %c0_i32 = arith.constant 0 : i32
    %c0_i32_0 = arith.constant 0 : i32
    %c0_i32_1 = arith.constant 0 : i32
    return %c0_i32, %c0_i32_0 : i32, i32
  }
  func.func @transform_2(%arg0: i32) -> (i32, i32) {
    %c0_i32 = arith.constant 0 : i32
    %c0_i32_0 = arith.constant 0 : i32
    %c0_i32_1 = arith.constant 0 : i32
    return %c0_i32, %c0_i32_0 : i32, i32
  }
  func.func @transform_3(%arg0: i32) -> (i32, i32) {
    %c0_i32 = arith.constant 0 : i32
    %c0_i32_0 = arith.constant 0 : i32
    %c0_i32_1 = arith.constant 0 : i32
    return %c0_i32, %c0_i32_0 : i32, i32
  }
}

module attributes {stable_mosaic.version = 11 : i64} {
  func.func @_conv2_cross_attention_kernel(%arg0: i32, %arg1: memref<1x8x512xf32, #tpu.memory_space<vmem>>, %arg2: memref<1x4x512xf32, #tpu.memory_space<vmem>>, %arg3: memref<9x512xf32, #tpu.memory_space<vmem>>, %arg4: memref<8x8xf32, #tpu.memory_space<vmem>>, %arg5: memref<1x4x8xf32, #tpu.memory_space<vmem>>, %arg6: memref<1x4x1xf32, #tpu.memory_space<vmem>>, %arg7: memref<1x4x4xf32, #tpu.memory_space<vmem>>, %arg8: memref<1x4x1xf32, #tpu.memory_space<vmem>>, %arg9: memref<1x4x9xf32, #tpu.memory_space<vmem>>, %arg10: memref<1x4x1xf32, #tpu.memory_space<vmem>>, %arg11: memref<1x8x4xf32, #tpu.memory_space<vmem>>, %arg12: memref<1x8x1xf32, #tpu.memory_space<vmem>>, %arg13: memref<1x8x9xf32, #tpu.memory_space<vmem>>, %arg14: memref<1x8x1xf32, #tpu.memory_space<vmem>>, %arg15: memref<1x4x4xf32, #tpu.memory_space<vmem>>, %arg16: memref<1x4x1xf32, #tpu.memory_space<vmem>>, %arg17: memref<1x8x1xf32, #tpu.memory_space<vmem>>, %arg18: memref<1x4x512xf32, #tpu.memory_space<vmem>>, %arg19: memref<3x8x256xf32, #tpu.memory_space<vmem>>) attributes {dimension_semantics = [#tpu.dimension_semantics<parallel>], iteration_bounds = array<i64: 2>, scalar_prefetch = 0 : i64, scratch_operands = 1 : i64, tpu.core_type = #tpu.core_type<tc>, window_params = [{transform_indices = @transform_0, window_bounds = array<i64: 1, 8, 512>}, {transform_indices = @transform_1, window_bounds = array<i64: 1, 4, 512>}, {pipeline_mode = #tpu.pipeline_mode<synchronous>, transform_indices = @transform_2, window_bounds = array<i64: 9, 512>}, {pipeline_mode = #tpu.pipeline_mode<synchronous>, transform_indices = @transform_3, window_bounds = array<i64: 8, 8>}, {transform_indices = @transform_4, window_bounds = array<i64: 1, 4, 8>}, {transform_indices = @transform_5, window_bounds = array<i64: 1, 4, 1>}, {transform_indices = @transform_6, window_bounds = array<i64: 1, 4, 4>}, {transform_indices = @transform_7, window_bounds = array<i64: 1, 4, 1>}, {transform_indices = @transform_8, window_bounds = array<i64: 1, 4, 9>}, {transform_indices = @transform_9, window_bounds = array<i64: 1, 4, 1>}, {transform_indices = @transform_10, window_bounds = array<i64: 1, 8, 4>}, {transform_indices = @transform_11, window_bounds = array<i64: 1, 8, 1>}, {transform_indices = @transform_12, window_bounds = array<i64: 1, 8, 9>}, {transform_indices = @transform_13, window_bounds = array<i64: 1, 8, 1>}, {transform_indices = @transform_14, window_bounds = array<i64: 1, 4, 4>}, {transform_indices = @transform_15, window_bounds = array<i64: 1, 4, 1>}, {transform_indices = @transform_16, window_bounds = array<i64: 1, 8, 1>}, {transform_indices = @transform_17, window_bounds = array<i64: 1, 4, 512>}]} {
    %c0 = arith.constant 0 : index
    %c0_0 = arith.constant 0 : index
    %c0_1 = arith.constant 0 : index
    %0 = vector.load %arg1[%c0, %c0_0, %c0_1] : memref<1x8x512xf32, #tpu.memory_space<vmem>>, vector<1x8x512xf32>
    %1 = vector.shape_cast %0 : vector<1x8x512xf32> to vector<8x512xf32>
    %c0_2 = arith.constant 0 : index
    %c0_3 = arith.constant 0 : index
    %c0_4 = arith.constant 0 : index
    %2 = vector.load %arg2[%c0_2, %c0_3, %c0_4] : memref<1x4x512xf32, #tpu.memory_space<vmem>>, vector<1x4x512xf32>
    %3 = vector.shape_cast %2 : vector<1x4x512xf32> to vector<4x512xf32>
    %c0_5 = arith.constant 0 : index
    %c0_6 = arith.constant 0 : index
    %4 = vector.load %arg3[%c0_5, %c0_6] : memref<9x512xf32, #tpu.memory_space<vmem>>, vector<9x512xf32>
    %c0_7 = arith.constant 0 : index
    %c0_8 = arith.constant 0 : index
    %c0_9 = arith.constant 0 : index
    %5 = vector.load %arg5[%c0_7, %c0_8, %c0_9] : memref<1x4x8xf32, #tpu.memory_space<vmem>>, vector<1x4x8xf32>
    %6 = vector.shape_cast %5 : vector<1x4x8xf32> to vector<4x8xf32>
    %cst = arith.constant dense<0.000000e+00> : vector<4x512xf32>
    %7 = tpu.matmul %6, %1, %cst {dimension_numbers = #tpu.dot_dimension_numbers<[1], [0], [0], [1], [0, 0, 1, 1], [], []>} : vector<4x8xf32>, vector<8x512xf32>, vector<4x512xf32> -> vector<4x512xf32>
    %c0_10 = arith.constant 0 : index
    %c0_11 = arith.constant 0 : index
    %c0_12 = arith.constant 0 : index
    %8 = vector.load %arg6[%c0_10, %c0_11, %c0_12] : memref<1x4x1xf32, #tpu.memory_space<vmem>>, vector<1x4x1xf32>
    %9 = vector.shape_cast %8 : vector<1x4x1xf32> to vector<4x1xf32>
    %10 = vector.broadcast %9 : vector<4x1xf32> to vector<4x512xf32>
    %11 = arith.addf %7, %10 : vector<4x512xf32>
    %c0_13 = arith.constant 0 : index
    %c0_14 = arith.constant 0 : index
    %c0_15 = arith.constant 0 : index
    %12 = vector.load %arg7[%c0_13, %c0_14, %c0_15] : memref<1x4x4xf32, #tpu.memory_space<vmem>>, vector<1x4x4xf32>
    %13 = vector.shape_cast %12 : vector<1x4x4xf32> to vector<4x4xf32>
    %cst_16 = arith.constant dense<0.000000e+00> : vector<4x512xf32>
    %14 = tpu.matmul %13, %11, %cst_16 {dimension_numbers = #tpu.dot_dimension_numbers<[1], [0], [0], [1], [0, 0, 1, 1], [], []>} : vector<4x4xf32>, vector<4x512xf32>, vector<4x512xf32> -> vector<4x512xf32>
    %c0_17 = arith.constant 0 : index
    %c0_18 = arith.constant 0 : index
    %c0_19 = arith.constant 0 : index
    %15 = vector.load %arg8[%c0_17, %c0_18, %c0_19] : memref<1x4x1xf32, #tpu.memory_space<vmem>>, vector<1x4x1xf32>
    %16 = vector.shape_cast %15 : vector<1x4x1xf32> to vector<4x1xf32>
    %17 = vector.broadcast %16 : vector<4x1xf32> to vector<4x512xf32>
    %18 = arith.addf %14, %17 : vector<4x512xf32>
    %c0_20 = arith.constant 0 : index
    %c0_21 = arith.constant 0 : index
    %c0_22 = arith.constant 0 : index
    %19 = vector.load %arg9[%c0_20, %c0_21, %c0_22] : memref<1x4x9xf32, #tpu.memory_space<vmem>>, vector<1x4x9xf32>
    %20 = vector.shape_cast %19 : vector<1x4x9xf32> to vector<4x9xf32>
    %c0_23 = arith.constant 0 : index
    %c0_24 = arith.constant 0 : index
    %c0_25 = arith.constant 0 : index
    %21 = vector.load %arg10[%c0_23, %c0_24, %c0_25] : memref<1x4x1xf32, #tpu.memory_space<vmem>>, vector<1x4x1xf32>
    %22 = vector.shape_cast %21 : vector<1x4x1xf32> to vector<4x1xf32>
    %cst_26 = arith.constant 0.000000e+00 : f32
    %23 = vector.broadcast %cst_26 : f32 to vector<4x512xf32>
    %c17_i32 = arith.constant 17 : i32
    %24 = tpu.dynamic_rotate %18 by %c17_i32 dim 1 : vector<4x512xf32>, i32 -> vector<4x512xf32>
    %25 = vector.extract_strided_slice %4 {offsets = [0, 0], sizes = [1, 512], strides = [1, 1]} : vector<9x512xf32> to vector<1x512xf32>
    %26 = vector.broadcast %25 : vector<1x512xf32> to vector<4x512xf32>
    %27 = arith.mulf %24, %26 : vector<4x512xf32>
    %28 = vector.extract_strided_slice %20 {offsets = [0, 0], sizes = [4, 1], strides = [1, 1]} : vector<4x9xf32> to vector<4x1xf32>
    %29 = vector.broadcast %28 : vector<4x1xf32> to vector<4x512xf32>
    %30 = arith.mulf %27, %29 : vector<4x512xf32>
    %31 = arith.addf %23, %30 : vector<4x512xf32>
    %c16_i32 = arith.constant 16 : i32
    %32 = tpu.dynamic_rotate %18 by %c16_i32 dim 1 : vector<4x512xf32>, i32 -> vector<4x512xf32>
    %33 = vector.extract_strided_slice %4 {offsets = [1, 0], sizes = [1, 512], strides = [1, 1]} : vector<9x512xf32> to vector<1x512xf32>
    %34 = vector.broadcast %33 : vector<1x512xf32> to vector<4x512xf32>
    %35 = arith.mulf %32, %34 : vector<4x512xf32>
    %36 = vector.extract_strided_slice %20 {offsets = [0, 1], sizes = [4, 1], strides = [1, 1]} : vector<4x9xf32> to vector<4x1xf32>
    %37 = vector.broadcast %36 : vector<4x1xf32> to vector<4x512xf32>
    %38 = arith.mulf %35, %37 : vector<4x512xf32>
    %39 = arith.addf %31, %38 : vector<4x512xf32>
    %c15_i32 = arith.constant 15 : i32
    %40 = tpu.dynamic_rotate %18 by %c15_i32 dim 1 : vector<4x512xf32>, i32 -> vector<4x512xf32>
    %41 = vector.extract_strided_slice %4 {offsets = [2, 0], sizes = [1, 512], strides = [1, 1]} : vector<9x512xf32> to vector<1x512xf32>
    %42 = vector.broadcast %41 : vector<1x512xf32> to vector<4x512xf32>
    %43 = arith.mulf %40, %42 : vector<4x512xf32>
    %44 = vector.extract_strided_slice %20 {offsets = [0, 2], sizes = [4, 1], strides = [1, 1]} : vector<4x9xf32> to vector<4x1xf32>
    %45 = vector.broadcast %44 : vector<4x1xf32> to vector<4x512xf32>
    %46 = arith.mulf %43, %45 : vector<4x512xf32>
    %47 = arith.addf %39, %46 : vector<4x512xf32>
    %c1_i32 = arith.constant 1 : i32
    %48 = tpu.dynamic_rotate %18 by %c1_i32 dim 1 : vector<4x512xf32>, i32 -> vector<4x512xf32>
    %49 = vector.extract_strided_slice %4 {offsets = [3, 0], sizes = [1, 512], strides = [1, 1]} : vector<9x512xf32> to vector<1x512xf32>
    %50 = vector.broadcast %49 : vector<1x512xf32> to vector<4x512xf32>
    %51 = arith.mulf %48, %50 : vector<4x512xf32>
    %52 = vector.extract_strided_slice %20 {offsets = [0, 3], sizes = [4, 1], strides = [1, 1]} : vector<4x9xf32> to vector<4x1xf32>
    %53 = vector.broadcast %52 : vector<4x1xf32> to vector<4x512xf32>
    %54 = arith.mulf %51, %53 : vector<4x512xf32>
    %55 = arith.addf %47, %54 : vector<4x512xf32>
    %56 = vector.extract_strided_slice %4 {offsets = [4, 0], sizes = [1, 512], strides = [1, 1]} : vector<9x512xf32> to vector<1x512xf32>
    %57 = vector.broadcast %56 : vector<1x512xf32> to vector<4x512xf32>
    %58 = arith.mulf %18, %57 : vector<4x512xf32>
    %59 = vector.extract_strided_slice %20 {offsets = [0, 4], sizes = [4, 1], strides = [1, 1]} : vector<4x9xf32> to vector<4x1xf32>
    %60 = vector.broadcast %59 : vector<4x1xf32> to vector<4x512xf32>
    %61 = arith.mulf %58, %60 : vector<4x512xf32>
    %62 = arith.addf %55, %61 : vector<4x512xf32>
    %c511_i32 = arith.constant 511 : i32
    %63 = tpu.dynamic_rotate %18 by %c511_i32 dim 1 : vector<4x512xf32>, i32 -> vector<4x512xf32>
    %64 = vector.extract_strided_slice %4 {offsets = [5, 0], sizes = [1, 512], strides = [1, 1]} : vector<9x512xf32> to vector<1x512xf32>
    %65 = vector.broadcast %64 : vector<1x512xf32> to vector<4x512xf32>
    %66 = arith.mulf %63, %65 : vector<4x512xf32>
    %67 = vector.extract_strided_slice %20 {offsets = [0, 5], sizes = [4, 1], strides = [1, 1]} : vector<4x9xf32> to vector<4x1xf32>
    %68 = vector.broadcast %67 : vector<4x1xf32> to vector<4x512xf32>
    %69 = arith.mulf %66, %68 : vector<4x512xf32>
    %70 = arith.addf %62, %69 : vector<4x512xf32>
    %c497_i32 = arith.constant 497 : i32
    %71 = tpu.dynamic_rotate %18 by %c497_i32 dim 1 : vector<4x512xf32>, i32 -> vector<4x512xf32>
    %72 = vector.extract_strided_slice %4 {offsets = [6, 0], sizes = [1, 512], strides = [1, 1]} : vector<9x512xf32> to vector<1x512xf32>
    %73 = vector.broadcast %72 : vector<1x512xf32> to vector<4x512xf32>
    %74 = arith.mulf %71, %73 : vector<4x512xf32>
    %75 = vector.extract_strided_slice %20 {offsets = [0, 6], sizes = [4, 1], strides = [1, 1]} : vector<4x9xf32> to vector<4x1xf32>
    %76 = vector.broadcast %75 : vector<4x1xf32> to vector<4x512xf32>
    %77 = arith.mulf %74, %76 : vector<4x512xf32>
    %78 = arith.addf %70, %77 : vector<4x512xf32>
    %c496_i32 = arith.constant 496 : i32
    %79 = tpu.dynamic_rotate %18 by %c496_i32 dim 1 : vector<4x512xf32>, i32 -> vector<4x512xf32>
    %80 = vector.extract_strided_slice %4 {offsets = [7, 0], sizes = [1, 512], strides = [1, 1]} : vector<9x512xf32> to vector<1x512xf32>
    %81 = vector.broadcast %80 : vector<1x512xf32> to vector<4x512xf32>
    %82 = arith.mulf %79, %81 : vector<4x512xf32>
    %83 = vector.extract_strided_slice %20 {offsets = [0, 7], sizes = [4, 1], strides = [1, 1]} : vector<4x9xf32> to vector<4x1xf32>
    %84 = vector.broadcast %83 : vector<4x1xf32> to vector<4x512xf32>
    %85 = arith.mulf %82, %84 : vector<4x512xf32>
    %86 = arith.addf %78, %85 : vector<4x512xf32>
    %c495_i32 = arith.constant 495 : i32
    %87 = tpu.dynamic_rotate %18 by %c495_i32 dim 1 : vector<4x512xf32>, i32 -> vector<4x512xf32>
    %88 = vector.extract_strided_slice %4 {offsets = [8, 0], sizes = [1, 512], strides = [1, 1]} : vector<9x512xf32> to vector<1x512xf32>
    %89 = vector.broadcast %88 : vector<1x512xf32> to vector<4x512xf32>
    %90 = arith.mulf %87, %89 : vector<4x512xf32>
    %91 = vector.extract_strided_slice %20 {offsets = [0, 8], sizes = [4, 1], strides = [1, 1]} : vector<4x9xf32> to vector<4x1xf32>
    %92 = vector.broadcast %91 : vector<4x1xf32> to vector<4x512xf32>
    %93 = arith.mulf %90, %92 : vector<4x512xf32>
    %94 = arith.addf %86, %93 : vector<4x512xf32>
    %95 = vector.broadcast %22 : vector<4x1xf32> to vector<4x512xf32>
    %96 = arith.addf %94, %95 : vector<4x512xf32>
    %c0_27 = arith.constant 0 : index
    %c0_28 = arith.constant 0 : index
    %c0_29 = arith.constant 0 : index
    %97 = vector.load %arg11[%c0_27, %c0_28, %c0_29] : memref<1x8x4xf32, #tpu.memory_space<vmem>>, vector<1x8x4xf32>
    %98 = vector.shape_cast %97 : vector<1x8x4xf32> to vector<8x4xf32>
    %cst_30 = arith.constant dense<0.000000e+00> : vector<8x512xf32>
    %99 = tpu.matmul %98, %3, %cst_30 {dimension_numbers = #tpu.dot_dimension_numbers<[1], [0], [0], [1], [0, 0, 1, 1], [], []>} : vector<8x4xf32>, vector<4x512xf32>, vector<8x512xf32> -> vector<8x512xf32>
    %c0_31 = arith.constant 0 : index
    %c0_32 = arith.constant 0 : index
    %c0_33 = arith.constant 0 : index
    %100 = vector.load %arg12[%c0_31, %c0_32, %c0_33] : memref<1x8x1xf32, #tpu.memory_space<vmem>>, vector<1x8x1xf32>
    %101 = vector.shape_cast %100 : vector<1x8x1xf32> to vector<8x1xf32>
    %102 = vector.broadcast %101 : vector<8x1xf32> to vector<8x512xf32>
    %103 = arith.addf %99, %102 : vector<8x512xf32>
    %c0_34 = arith.constant 0 : index
    %c0_35 = arith.constant 0 : index
    %c0_36 = arith.constant 0 : index
    %104 = vector.load %arg13[%c0_34, %c0_35, %c0_36] : memref<1x8x9xf32, #tpu.memory_space<vmem>>, vector<1x8x9xf32>
    %105 = vector.shape_cast %104 : vector<1x8x9xf32> to vector<8x9xf32>
    %c0_37 = arith.constant 0 : index
    %c0_38 = arith.constant 0 : index
    %c0_39 = arith.constant 0 : index
    %106 = vector.load %arg14[%c0_37, %c0_38, %c0_39] : memref<1x8x1xf32, #tpu.memory_space<vmem>>, vector<1x8x1xf32>
    %107 = vector.shape_cast %106 : vector<1x8x1xf32> to vector<8x1xf32>
    %cst_40 = arith.constant 0.000000e+00 : f32
    %108 = vector.broadcast %cst_40 : f32 to vector<8x512xf32>
    %c17_i32_41 = arith.constant 17 : i32
    %109 = tpu.dynamic_rotate %103 by %c17_i32_41 dim 1 : vector<8x512xf32>, i32 -> vector<8x512xf32>
    %110 = vector.extract_strided_slice %4 {offsets = [0, 0], sizes = [1, 512], strides = [1, 1]} : vector<9x512xf32> to vector<1x512xf32>
    %111 = vector.broadcast %110 : vector<1x512xf32> to vector<8x512xf32>
    %112 = arith.mulf %109, %111 : vector<8x512xf32>
    %113 = vector.extract_strided_slice %105 {offsets = [0, 0], sizes = [8, 1], strides = [1, 1]} : vector<8x9xf32> to vector<8x1xf32>
    %114 = vector.broadcast %113 : vector<8x1xf32> to vector<8x512xf32>
    %115 = arith.mulf %112, %114 : vector<8x512xf32>
    %116 = arith.addf %108, %115 : vector<8x512xf32>
    %c16_i32_42 = arith.constant 16 : i32
    %117 = tpu.dynamic_rotate %103 by %c16_i32_42 dim 1 : vector<8x512xf32>, i32 -> vector<8x512xf32>
    %118 = vector.extract_strided_slice %4 {offsets = [1, 0], sizes = [1, 512], strides = [1, 1]} : vector<9x512xf32> to vector<1x512xf32>
    %119 = vector.broadcast %118 : vector<1x512xf32> to vector<8x512xf32>
    %120 = arith.mulf %117, %119 : vector<8x512xf32>
    %121 = vector.extract_strided_slice %105 {offsets = [0, 1], sizes = [8, 1], strides = [1, 1]} : vector<8x9xf32> to vector<8x1xf32>
    %122 = vector.broadcast %121 : vector<8x1xf32> to vector<8x512xf32>
    %123 = arith.mulf %120, %122 : vector<8x512xf32>
    %124 = arith.addf %116, %123 : vector<8x512xf32>
    %c15_i32_43 = arith.constant 15 : i32
    %125 = tpu.dynamic_rotate %103 by %c15_i32_43 dim 1 : vector<8x512xf32>, i32 -> vector<8x512xf32>
    %126 = vector.extract_strided_slice %4 {offsets = [2, 0], sizes = [1, 512], strides = [1, 1]} : vector<9x512xf32> to vector<1x512xf32>
    %127 = vector.broadcast %126 : vector<1x512xf32> to vector<8x512xf32>
    %128 = arith.mulf %125, %127 : vector<8x512xf32>
    %129 = vector.extract_strided_slice %105 {offsets = [0, 2], sizes = [8, 1], strides = [1, 1]} : vector<8x9xf32> to vector<8x1xf32>
    %130 = vector.broadcast %129 : vector<8x1xf32> to vector<8x512xf32>
    %131 = arith.mulf %128, %130 : vector<8x512xf32>
    %132 = arith.addf %124, %131 : vector<8x512xf32>
    %c1_i32_44 = arith.constant 1 : i32
    %133 = tpu.dynamic_rotate %103 by %c1_i32_44 dim 1 : vector<8x512xf32>, i32 -> vector<8x512xf32>
    %134 = vector.extract_strided_slice %4 {offsets = [3, 0], sizes = [1, 512], strides = [1, 1]} : vector<9x512xf32> to vector<1x512xf32>
    %135 = vector.broadcast %134 : vector<1x512xf32> to vector<8x512xf32>
    %136 = arith.mulf %133, %135 : vector<8x512xf32>
    %137 = vector.extract_strided_slice %105 {offsets = [0, 3], sizes = [8, 1], strides = [1, 1]} : vector<8x9xf32> to vector<8x1xf32>
    %138 = vector.broadcast %137 : vector<8x1xf32> to vector<8x512xf32>
    %139 = arith.mulf %136, %138 : vector<8x512xf32>
    %140 = arith.addf %132, %139 : vector<8x512xf32>
    %141 = vector.extract_strided_slice %4 {offsets = [4, 0], sizes = [1, 512], strides = [1, 1]} : vector<9x512xf32> to vector<1x512xf32>
    %142 = vector.broadcast %141 : vector<1x512xf32> to vector<8x512xf32>
    %143 = arith.mulf %103, %142 : vector<8x512xf32>
    %144 = vector.extract_strided_slice %105 {offsets = [0, 4], sizes = [8, 1], strides = [1, 1]} : vector<8x9xf32> to vector<8x1xf32>
    %145 = vector.broadcast %144 : vector<8x1xf32> to vector<8x512xf32>
    %146 = arith.mulf %143, %145 : vector<8x512xf32>
    %147 = arith.addf %140, %146 : vector<8x512xf32>
    %c511_i32_45 = arith.constant 511 : i32
    %148 = tpu.dynamic_rotate %103 by %c511_i32_45 dim 1 : vector<8x512xf32>, i32 -> vector<8x512xf32>
    %149 = vector.extract_strided_slice %4 {offsets = [5, 0], sizes = [1, 512], strides = [1, 1]} : vector<9x512xf32> to vector<1x512xf32>
    %150 = vector.broadcast %149 : vector<1x512xf32> to vector<8x512xf32>
    %151 = arith.mulf %148, %150 : vector<8x512xf32>
    %152 = vector.extract_strided_slice %105 {offsets = [0, 5], sizes = [8, 1], strides = [1, 1]} : vector<8x9xf32> to vector<8x1xf32>
    %153 = vector.broadcast %152 : vector<8x1xf32> to vector<8x512xf32>
    %154 = arith.mulf %151, %153 : vector<8x512xf32>
    %155 = arith.addf %147, %154 : vector<8x512xf32>
    %c497_i32_46 = arith.constant 497 : i32
    %156 = tpu.dynamic_rotate %103 by %c497_i32_46 dim 1 : vector<8x512xf32>, i32 -> vector<8x512xf32>
    %157 = vector.extract_strided_slice %4 {offsets = [6, 0], sizes = [1, 512], strides = [1, 1]} : vector<9x512xf32> to vector<1x512xf32>
    %158 = vector.broadcast %157 : vector<1x512xf32> to vector<8x512xf32>
    %159 = arith.mulf %156, %158 : vector<8x512xf32>
    %160 = vector.extract_strided_slice %105 {offsets = [0, 6], sizes = [8, 1], strides = [1, 1]} : vector<8x9xf32> to vector<8x1xf32>
    %161 = vector.broadcast %160 : vector<8x1xf32> to vector<8x512xf32>
    %162 = arith.mulf %159, %161 : vector<8x512xf32>
    %163 = arith.addf %155, %162 : vector<8x512xf32>
    %c496_i32_47 = arith.constant 496 : i32
    %164 = tpu.dynamic_rotate %103 by %c496_i32_47 dim 1 : vector<8x512xf32>, i32 -> vector<8x512xf32>
    %165 = vector.extract_strided_slice %4 {offsets = [7, 0], sizes = [1, 512], strides = [1, 1]} : vector<9x512xf32> to vector<1x512xf32>
    %166 = vector.broadcast %165 : vector<1x512xf32> to vector<8x512xf32>
    %167 = arith.mulf %164, %166 : vector<8x512xf32>
    %168 = vector.extract_strided_slice %105 {offsets = [0, 7], sizes = [8, 1], strides = [1, 1]} : vector<8x9xf32> to vector<8x1xf32>
    %169 = vector.broadcast %168 : vector<8x1xf32> to vector<8x512xf32>
    %170 = arith.mulf %167, %169 : vector<8x512xf32>
    %171 = arith.addf %163, %170 : vector<8x512xf32>
    %c495_i32_48 = arith.constant 495 : i32
    %172 = tpu.dynamic_rotate %103 by %c495_i32_48 dim 1 : vector<8x512xf32>, i32 -> vector<8x512xf32>
    %173 = vector.extract_strided_slice %4 {offsets = [8, 0], sizes = [1, 512], strides = [1, 1]} : vector<9x512xf32> to vector<1x512xf32>
    %174 = vector.broadcast %173 : vector<1x512xf32> to vector<8x512xf32>
    %175 = arith.mulf %172, %174 : vector<8x512xf32>
    %176 = vector.extract_strided_slice %105 {offsets = [0, 8], sizes = [8, 1], strides = [1, 1]} : vector<8x9xf32> to vector<8x1xf32>
    %177 = vector.broadcast %176 : vector<8x1xf32> to vector<8x512xf32>
    %178 = arith.mulf %175, %177 : vector<8x512xf32>
    %179 = arith.addf %171, %178 : vector<8x512xf32>
    %180 = vector.broadcast %107 : vector<8x1xf32> to vector<8x512xf32>
    %181 = arith.addf %179, %180 : vector<8x512xf32>
    %182 = vector.extract_strided_slice %181 {offsets = [0, 0], sizes = [4, 512], strides = [1, 1]} : vector<8x512xf32> to vector<4x512xf32>
    %183 = vector.extract_strided_slice %181 {offsets = [4, 0], sizes = [4, 512], strides = [1, 1]} : vector<8x512xf32> to vector<4x512xf32>
    %184 = vector.extract_strided_slice %96 {offsets = [0, 0], sizes = [4, 256], strides = [1, 1]} : vector<4x512xf32> to vector<4x256xf32>
    %c0_49 = arith.constant 0 : index
    %c0_50 = arith.constant 0 : index
    %c0_51 = arith.constant 0 : index
    %185 = vector.load %arg19[%c0_49, %c0_50, %c0_51] : memref<3x8x256xf32, #tpu.memory_space<vmem>>, vector<1x4x256xf32>
    %186 = vector.shape_cast %185 : vector<1x4x256xf32> to vector<4x256xf32>
    %187 = vector.shape_cast %184 : vector<4x256xf32> to vector<1x4x256xf32>
    tpu.vector_store %arg19[%c0_49, %c0_50, %c0_51], %187 {strides = array<i32>} : memref<3x8x256xf32, #tpu.memory_space<vmem>>, vector<1x4x256xf32>,
    %188 = vector.extract_strided_slice %182 {offsets = [0, 0], sizes = [4, 256], strides = [1, 1]} : vector<4x512xf32> to vector<4x256xf32>
    %c1 = arith.constant 1 : index
    %c0_52 = arith.constant 0 : index
    %c0_53 = arith.constant 0 : index
    %189 = vector.load %arg19[%c1, %c0_52, %c0_53] : memref<3x8x256xf32, #tpu.memory_space<vmem>>, vector<1x4x256xf32>
    %190 = vector.shape_cast %189 : vector<1x4x256xf32> to vector<4x256xf32>
    %191 = vector.shape_cast %188 : vector<4x256xf32> to vector<1x4x256xf32>
    tpu.vector_store %arg19[%c1, %c0_52, %c0_53], %191 {strides = array<i32>} : memref<3x8x256xf32, #tpu.memory_space<vmem>>, vector<1x4x256xf32>,
    %192 = vector.extract_strided_slice %183 {offsets = [0, 0], sizes = [4, 256], strides = [1, 1]} : vector<4x512xf32> to vector<4x256xf32>
    %c2 = arith.constant 2 : index
    %c0_54 = arith.constant 0 : index
    %c0_55 = arith.constant 0 : index
    %193 = vector.load %arg19[%c2, %c0_54, %c0_55] : memref<3x8x256xf32, #tpu.memory_space<vmem>>, vector<1x4x256xf32>
    %194 = vector.shape_cast %193 : vector<1x4x256xf32> to vector<4x256xf32>
    %195 = vector.shape_cast %192 : vector<4x256xf32> to vector<1x4x256xf32>
    tpu.vector_store %arg19[%c2, %c0_54, %c0_55], %195 {strides = array<i32>} : memref<3x8x256xf32, #tpu.memory_space<vmem>>, vector<1x4x256xf32>,
    %196 = vector.extract_strided_slice %96 {offsets = [0, 256], sizes = [4, 256], strides = [1, 1]} : vector<4x512xf32> to vector<4x256xf32>
    %c0_56 = arith.constant 0 : index
    %c4 = arith.constant 4 : index
    %c0_57 = arith.constant 0 : index
    %197 = vector.load %arg19[%c0_56, %c4, %c0_57] : memref<3x8x256xf32, #tpu.memory_space<vmem>>, vector<1x4x256xf32>
    %198 = vector.shape_cast %197 : vector<1x4x256xf32> to vector<4x256xf32>
    %199 = vector.shape_cast %196 : vector<4x256xf32> to vector<1x4x256xf32>
    tpu.vector_store %arg19[%c0_56, %c4, %c0_57], %199 {strides = array<i32>} : memref<3x8x256xf32, #tpu.memory_space<vmem>>, vector<1x4x256xf32>,
    %200 = vector.extract_strided_slice %182 {offsets = [0, 256], sizes = [4, 256], strides = [1, 1]} : vector<4x512xf32> to vector<4x256xf32>
    %c1_58 = arith.constant 1 : index
    %c4_59 = arith.constant 4 : index
    %c0_60 = arith.constant 0 : index
    %201 = vector.load %arg19[%c1_58, %c4_59, %c0_60] : memref<3x8x256xf32, #tpu.memory_space<vmem>>, vector<1x4x256xf32>
    %202 = vector.shape_cast %201 : vector<1x4x256xf32> to vector<4x256xf32>
    %203 = vector.shape_cast %200 : vector<4x256xf32> to vector<1x4x256xf32>
    tpu.vector_store %arg19[%c1_58, %c4_59, %c0_60], %203 {strides = array<i32>} : memref<3x8x256xf32, #tpu.memory_space<vmem>>, vector<1x4x256xf32>,
    %204 = vector.extract_strided_slice %183 {offsets = [0, 256], sizes = [4, 256], strides = [1, 1]} : vector<4x512xf32> to vector<4x256xf32>
    %c2_61 = arith.constant 2 : index
    %c4_62 = arith.constant 4 : index
    %c0_63 = arith.constant 0 : index
    %205 = vector.load %arg19[%c2_61, %c4_62, %c0_63] : memref<3x8x256xf32, #tpu.memory_space<vmem>>, vector<1x4x256xf32>
    %206 = vector.shape_cast %205 : vector<1x4x256xf32> to vector<4x256xf32>
    %207 = vector.shape_cast %204 : vector<4x256xf32> to vector<1x4x256xf32>
    tpu.vector_store %arg19[%c2_61, %c4_62, %c0_63], %207 {strides = array<i32>} : memref<3x8x256xf32, #tpu.memory_space<vmem>>, vector<1x4x256xf32>,
    %c0_64 = arith.constant 0 : index
    %c0_65 = arith.constant 0 : index
    %c0_66 = arith.constant 0 : index
    %208 = vector.load %arg19[%c0_64, %c0_65, %c0_66] : memref<3x8x256xf32, #tpu.memory_space<vmem>>, vector<1x8x256xf32>
    %209 = vector.shape_cast %208 : vector<1x8x256xf32> to vector<8x256xf32>
    %c1_67 = arith.constant 1 : index
    %c0_68 = arith.constant 0 : index
    %c0_69 = arith.constant 0 : index
    %210 = vector.load %arg19[%c1_67, %c0_68, %c0_69] : memref<3x8x256xf32, #tpu.memory_space<vmem>>, vector<1x8x256xf32>
    %211 = vector.shape_cast %210 : vector<1x8x256xf32> to vector<8x256xf32>
    %c2_70 = arith.constant 2 : index
    %c0_71 = arith.constant 0 : index
    %c0_72 = arith.constant 0 : index
    %212 = vector.load %arg19[%c2_70, %c0_71, %c0_72] : memref<3x8x256xf32, #tpu.memory_space<vmem>>, vector<1x8x256xf32>
    %213 = vector.shape_cast %212 : vector<1x8x256xf32> to vector<8x256xf32>
    %214 = arith.mulf %209, %209 : vector<8x256xf32>
    %cst_73 = arith.constant dense<0.000000e+00> : vector<8xf32>
    %215 = vector.multi_reduction <add>, %214, %cst_73 [1] : vector<8x256xf32> to vector<8xf32>
    %216 = vector.shape_cast %215 : vector<8xf32> to vector<8x1xf32>
    %cst_74 = arith.constant 9.99999996E-13 : f32
    %cst_75 = arith.constant 9.99999996E-13 : f32
    %217 = arith.mulf %cst_74, %cst_75 : f32
    %218 = vector.broadcast %217 : f32 to vector<8x1xf32>
    %219 = arith.maximumf %216, %218 : vector<8x1xf32>
    %220 = math.rsqrt %219 : vector<8x1xf32>
    %221 = vector.broadcast %220 : vector<8x1xf32> to vector<8x256xf32>
    %222 = arith.mulf %209, %221 : vector<8x256xf32>
    %223 = arith.mulf %211, %211 : vector<8x256xf32>
    %cst_76 = arith.constant dense<0.000000e+00> : vector<8xf32>
    %224 = vector.multi_reduction <add>, %223, %cst_76 [1] : vector<8x256xf32> to vector<8xf32>
    %225 = vector.shape_cast %224 : vector<8xf32> to vector<8x1xf32>
    %cst_77 = arith.constant 9.99999996E-13 : f32
    %cst_78 = arith.constant 9.99999996E-13 : f32
    %226 = arith.mulf %cst_77, %cst_78 : f32
    %227 = vector.broadcast %226 : f32 to vector<8x1xf32>
    %228 = arith.maximumf %225, %227 : vector<8x1xf32>
    %229 = math.rsqrt %228 : vector<8x1xf32>
    %230 = vector.broadcast %229 : vector<8x1xf32> to vector<8x256xf32>
    %231 = arith.mulf %211, %230 : vector<8x256xf32>
    %cst_79 = arith.constant dense<0.000000e+00> : vector<8x8xf32>
    %232 = tpu.matmul %222, %231, %cst_79 {dimension_numbers = #tpu.dot_dimension_numbers<[1], [1], [0], [0], [0, 0, 1, 0], [], []>} : vector<8x256xf32>, vector<8x256xf32>, vector<8x8xf32> -> vector<8x8xf32>
    %c0_80 = arith.constant 0 : index
    %c0_81 = arith.constant 0 : index
    %c0_82 = arith.constant 0 : index
    %233 = vector.load %arg17[%c0_80, %c0_81, %c0_82] : memref<1x8x1xf32, #tpu.memory_space<vmem>>, vector<1x8x1xf32>
    %234 = vector.shape_cast %233 : vector<1x8x1xf32> to vector<8x1xf32>
    %235 = vector.broadcast %234 : vector<8x1xf32> to vector<8x8xf32>
    %236 = arith.mulf %232, %235 : vector<8x8xf32>
    %c0_83 = arith.constant 0 : index
    %c0_84 = arith.constant 0 : index
    %237 = vector.load %arg4[%c0_83, %c0_84] : memref<8x8xf32, #tpu.memory_space<vmem>>, vector<8x8xf32>
    %cst_85 = arith.constant 0.000000e+00 : f32
    %238 = vector.broadcast %cst_85 : f32 to vector<8x8xf32>
    %239 = arith.cmpf ogt, %237, %238 : vector<8x8xf32>
    %cst_86 = arith.constant -1.000000e+30 : f32
    %240 = vector.broadcast %cst_86 : f32 to vector<8x8xf32>
    %241 = arith.select %239, %236, %240 : vector<8x8xi1>, vector<8x8xf32>
    %cst_87 = arith.constant dense<0xFF800000> : vector<8xf32>
    %242 = vector.multi_reduction <maximumf>, %241, %cst_87 [1] : vector<8x8xf32> to vector<8xf32>
    %243 = vector.shape_cast %242 : vector<8xf32> to vector<8x1xf32>
    %244 = vector.broadcast %243 : vector<8x1xf32> to vector<8x8xf32>
    %245 = arith.subf %241, %244 : vector<8x8xf32>
    %246 = math.exp %245 : vector<8x8xf32>
    %cst_88 = arith.constant dense<0.000000e+00> : vector<8xf32>
    %247 = vector.multi_reduction <add>, %246, %cst_88 [1] : vector<8x8xf32> to vector<8xf32>
    %248 = vector.shape_cast %247 : vector<8xf32> to vector<8x1xf32>
    %249 = vector.broadcast %248 : vector<8x1xf32> to vector<8x8xf32>
    %250 = arith.divf %246, %249 : vector<8x8xf32>
    %cst_89 = arith.constant dense<0.000000e+00> : vector<8x256xf32>
    %251 = tpu.matmul %250, %213, %cst_89 {dimension_numbers = #tpu.dot_dimension_numbers<[1], [0], [0], [1], [0, 0, 1, 1], [], []>} : vector<8x8xf32>, vector<8x256xf32>, vector<8x256xf32> -> vector<8x256xf32>
    %c0_90 = arith.constant 0 : index
    %c0_91 = arith.constant 0 : index
    %c0_92 = arith.constant 0 : index
    %252 = vector.load %arg15[%c0_90, %c0_91, %c0_92] : memref<1x4x4xf32, #tpu.memory_space<vmem>>, vector<1x4x4xf32>
    %253 = vector.shape_cast %252 : vector<1x4x4xf32> to vector<4x4xf32>
    %254 = vector.extract_strided_slice %251 {offsets = [0, 0], sizes = [4, 256], strides = [1, 1]} : vector<8x256xf32> to vector<4x256xf32>
    %cst_93 = arith.constant dense<0.000000e+00> : vector<4x256xf32>
    %255 = tpu.matmul %253, %254, %cst_93 {dimension_numbers = #tpu.dot_dimension_numbers<[1], [0], [0], [1], [0, 0, 1, 1], [], []>} : vector<4x4xf32>, vector<4x256xf32>, vector<4x256xf32> -> vector<4x256xf32>
    %c0_94 = arith.constant 0 : index
    %c0_95 = arith.constant 0 : index
    %c0_96 = arith.constant 0 : index
    %256 = vector.load %arg16[%c0_94, %c0_95, %c0_96] : memref<1x4x1xf32, #tpu.memory_space<vmem>>, vector<1x4x1xf32>
    %257 = vector.shape_cast %256 : vector<1x4x1xf32> to vector<4x1xf32>
    %258 = vector.broadcast %257 : vector<4x1xf32> to vector<4x256xf32>
    %259 = arith.addf %255, %258 : vector<4x256xf32>
    %c0_97 = arith.constant 0 : index
    %c0_98 = arith.constant 0 : index
    %c0_99 = arith.constant 0 : index
    %260 = vector.load %arg18[%c0_97, %c0_98, %c0_99] : memref<1x4x512xf32, #tpu.memory_space<vmem>>, vector<1x4x256xf32>
    %261 = vector.shape_cast %260 : vector<1x4x256xf32> to vector<4x256xf32>
    %262 = vector.shape_cast %259 : vector<4x256xf32> to vector<1x4x256xf32>
    tpu.vector_store %arg18[%c0_97, %c0_98, %c0_99], %262 {strides = array<i32>} : memref<1x4x512xf32, #tpu.memory_space<vmem>>, vector<1x4x256xf32>,
    %c0_100 = arith.constant 0 : index
    %c0_101 = arith.constant 0 : index
    %c0_102 = arith.constant 0 : index
    %263 = vector.load %arg15[%c0_100, %c0_101, %c0_102] : memref<1x4x4xf32, #tpu.memory_space<vmem>>, vector<1x4x4xf32>
    %264 = vector.shape_cast %263 : vector<1x4x4xf32> to vector<4x4xf32>
    %265 = vector.extract_strided_slice %251 {offsets = [4, 0], sizes = [4, 256], strides = [1, 1]} : vector<8x256xf32> to vector<4x256xf32>
    %cst_103 = arith.constant dense<0.000000e+00> : vector<4x256xf32>
    %266 = tpu.matmul %264, %265, %cst_103 {dimension_numbers = #tpu.dot_dimension_numbers<[1], [0], [0], [1], [0, 0, 1, 1], [], []>} : vector<4x4xf32>, vector<4x256xf32>, vector<4x256xf32> -> vector<4x256xf32>
    %c0_104 = arith.constant 0 : index
    %c0_105 = arith.constant 0 : index
    %c0_106 = arith.constant 0 : index
    %267 = vector.load %arg16[%c0_104, %c0_105, %c0_106] : memref<1x4x1xf32, #tpu.memory_space<vmem>>, vector<1x4x1xf32>
    %268 = vector.shape_cast %267 : vector<1x4x1xf32> to vector<4x1xf32>
    %269 = vector.broadcast %268 : vector<4x1xf32> to vector<4x256xf32>
    %270 = arith.addf %266, %269 : vector<4x256xf32>
    %c0_107 = arith.constant 0 : index
    %c0_108 = arith.constant 0 : index
    %c256 = arith.constant 256 : index
    %271 = vector.load %arg18[%c0_107, %c0_108, %c256] : memref<1x4x512xf32, #tpu.memory_space<vmem>>, vector<1x4x256xf32>
    %272 = vector.shape_cast %271 : vector<1x4x256xf32> to vector<4x256xf32>
    %273 = vector.shape_cast %270 : vector<4x256xf32> to vector<1x4x256xf32>
    tpu.vector_store %arg18[%c0_107, %c0_108, %c256], %273 {strides = array<i32>} : memref<1x4x512xf32, #tpu.memory_space<vmem>>, vector<1x4x256xf32>,
    return
  }
  func.func @transform_0(%arg0: i32) -> (i32, i32, i32) {
    %c0_i32 = arith.constant 0 : i32
    %c0_i32_0 = arith.constant 0 : i32
    %c0_i32_1 = arith.constant 0 : i32
    return %arg0, %c0_i32, %c0_i32_0 : i32, i32, i32
  }
  func.func @transform_1(%arg0: i32) -> (i32, i32, i32) {
    %c0_i32 = arith.constant 0 : i32
    %c0_i32_0 = arith.constant 0 : i32
    %c0_i32_1 = arith.constant 0 : i32
    return %arg0, %c0_i32, %c0_i32_0 : i32, i32, i32
  }
  func.func @transform_2(%arg0: i32) -> (i32, i32) {
    %c0_i32 = arith.constant 0 : i32
    %c0_i32_0 = arith.constant 0 : i32
    %c0_i32_1 = arith.constant 0 : i32
    return %c0_i32, %c0_i32_0 : i32, i32
  }
  func.func @transform_3(%arg0: i32) -> (i32, i32) {
    %c0_i32 = arith.constant 0 : i32
    %c0_i32_0 = arith.constant 0 : i32
    %c0_i32_1 = arith.constant 0 : i32
    return %c0_i32, %c0_i32_0 : i32, i32
  }
  func.func @transform_4(%arg0: i32) -> (i32, i32, i32) {
    %c0_i32 = arith.constant 0 : i32
    %c0_i32_0 = arith.constant 0 : i32
    %c0_i32_1 = arith.constant 0 : i32
    return %arg0, %c0_i32, %c0_i32_0 : i32, i32, i32
  }
  func.func @transform_5(%arg0: i32) -> (i32, i32, i32) {
    %c0_i32 = arith.constant 0 : i32
    %c0_i32_0 = arith.constant 0 : i32
    %c0_i32_1 = arith.constant 0 : i32
    return %arg0, %c0_i32, %c0_i32_0 : i32, i32, i32
  }
  func.func @transform_6(%arg0: i32) -> (i32, i32, i32) {
    %c0_i32 = arith.constant 0 : i32
    %c0_i32_0 = arith.constant 0 : i32
    %c0_i32_1 = arith.constant 0 : i32
    return %arg0, %c0_i32, %c0_i32_0 : i32, i32, i32
  }
  func.func @transform_7(%arg0: i32) -> (i32, i32, i32) {
    %c0_i32 = arith.constant 0 : i32
    %c0_i32_0 = arith.constant 0 : i32
    %c0_i32_1 = arith.constant 0 : i32
    return %arg0, %c0_i32, %c0_i32_0 : i32, i32, i32
  }
  func.func @transform_8(%arg0: i32) -> (i32, i32, i32) {
    %c0_i32 = arith.constant 0 : i32
    %c0_i32_0 = arith.constant 0 : i32
    %c0_i32_1 = arith.constant 0 : i32
    return %arg0, %c0_i32, %c0_i32_0 : i32, i32, i32
  }
  func.func @transform_9(%arg0: i32) -> (i32, i32, i32) {
    %c0_i32 = arith.constant 0 : i32
    %c0_i32_0 = arith.constant 0 : i32
    %c0_i32_1 = arith.constant 0 : i32
    return %arg0, %c0_i32, %c0_i32_0 : i32, i32, i32
  }
  func.func @transform_10(%arg0: i32) -> (i32, i32, i32) {
    %c0_i32 = arith.constant 0 : i32
    %c0_i32_0 = arith.constant 0 : i32
    %c0_i32_1 = arith.constant 0 : i32
    return %arg0, %c0_i32, %c0_i32_0 : i32, i32, i32
  }
  func.func @transform_11(%arg0: i32) -> (i32, i32, i32) {
    %c0_i32 = arith.constant 0 : i32
    %c0_i32_0 = arith.constant 0 : i32
    %c0_i32_1 = arith.constant 0 : i32
    return %arg0, %c0_i32, %c0_i32_0 : i32, i32, i32
  }
  func.func @transform_12(%arg0: i32) -> (i32, i32, i32) {
    %c0_i32 = arith.constant 0 : i32
    %c0_i32_0 = arith.constant 0 : i32
    %c0_i32_1 = arith.constant 0 : i32
    return %arg0, %c0_i32, %c0_i32_0 : i32, i32, i32
  }
  func.func @transform_13(%arg0: i32) -> (i32, i32, i32) {
    %c0_i32 = arith.constant 0 : i32
    %c0_i32_0 = arith.constant 0 : i32
    %c0_i32_1 = arith.constant 0 : i32
    return %arg0, %c0_i32, %c0_i32_0 : i32, i32, i32
  }
  func.func @transform_14(%arg0: i32) -> (i32, i32, i32) {
    %c0_i32 = arith.constant 0 : i32
    %c0_i32_0 = arith.constant 0 : i32
    %c0_i32_1 = arith.constant 0 : i32
    return %arg0, %c0_i32, %c0_i32_0 : i32, i32, i32
  }
  func.func @transform_15(%arg0: i32) -> (i32, i32, i32) {
    %c0_i32 = arith.constant 0 : i32
    %c0_i32_0 = arith.constant 0 : i32
    %c0_i32_1 = arith.constant 0 : i32
    return %arg0, %c0_i32, %c0_i32_0 : i32, i32, i32
  }
  func.func @transform_16(%arg0: i32) -> (i32, i32, i32) {
    %c0_i32 = arith.constant 0 : i32
    %c0_i32_0 = arith.constant 0 : i32
    %c0_i32_1 = arith.constant 0 : i32
    return %arg0, %c0_i32, %c0_i32_0 : i32, i32, i32
  }
  func.func @transform_17(%arg0: i32) -> (i32, i32, i32) {
    %c0_i32 = arith.constant 0 : i32
    %c0_i32_0 = arith.constant 0 : i32
    %c0_i32_1 = arith.constant 0 : i32
    return %arg0, %c0_i32, %c0_i32_0 : i32, i32, i32
  }
}

</mosaic_0001>

<bundles_post_ra>
// kernel: afsi_forward.2
= control target key start
LH: loop header
LB: loop body
LE: loop exit
PB: predicated region body
PF: predicated region fallthrough
CT: control target
= control target key end

     0   :  { %s313_s18 = smov 111   ;;  %s314_s19 = smov 112   ;;  %v34_v6 = vlaneseq  ;;  %vm205_vm8 = vcmask 588800   ;;  %s586_s0 = inlined_call_operand.vmem [shape: f32[8,512], index: 0, kind: input, shape index: {}]   ;;  %s587_s2 = inlined_call_operand.vmem [shape: f32[9,512], index: 2, kind: input, shape index: {}]   ;;  %s588_s1 = inlined_call_operand.vmem [shape: f32[8,72], index: 1, kind: input, shape index: {}]   ;;  %s589_s3 = inlined_call_operand.vmem [shape: f32[8,512], index: 3, kind: output, shape index: {}]  }
   0x1   :  { %v344_v0 = vld [vmem:[%s586_s0 + $0x18] sm:$0xff]  ;;  %v349_v1 = vld [vmem:[%s586_s0 + $0x10] sm:$0xff]  ;;  %v354_v2 = vld [vmem:[%s586_s0] sm:$0xff]  ;;  %s315_s20 = smov 113   ;;  %s316_s21 = smov 127  }
   0x2   :  { %189 = vrot.lane.b32.xlu1 %v344_v0, %s313_s18  ;;  %166 = vrot.lane.b32.xlu2 %v349_v1, %s314_s19  ;;  %v371_v3 = vld [vmem:[%s586_s0 + $0x8] sm:$0xff]  ;;  %s317_s24 = smov 1   ;;  %s318_s25 = smov 15   ;;  %v395_v7 = vand.u32 127, %v34_v6  ;;  %v309_v8 = vld [vmem:[%s587_s2 + $0x38] ss:$0 sm:$0xff] }
   0x3   :  { %183 = vrot.lane.b32.xlu0 %v354_v2, %s313_s18  ;;  %s319_s0 = smov 16   ;;  %s320_s26 = smov 17   ;;  %v409_v14 = vld [vmem:[%s587_s2 + $0x18] sm:$0xff]  ;;  %v414_v15 = vld [vmem:[%s587_s2 + $0x10] sm:$0xff]  ;;  %v311_v50 = vld [vmem:[%s587_s2 + $0x20] ss:$0 sm:$0xff] }
   0x4   :  { %vm191_vm0 = vcmp.lt.s32.totalorder %v395_v7, 111  ;;  %v178_v16 = vperm.slane %v409_v14, 7  ;;  %vm170_vm1 = vcmp.lt.s32.totalorder %v395_v7, 112  ;;  %v310_v17 = vld [vmem:[%s587_s2 + $0x30] ss:$0 sm:$0xff]  ;;  %v177_v21 = vperm.slane %v414_v15, 7 }
   0x5   :  { %v156_v28 = vperm.slane %v414_v15, 6  ;;  %vm149_vm2 = vcmp.lt.s32.totalorder %v395_v7, 113  ;;  %v157_v29 = vperm.slane %v409_v14, 6  ;;  %v135_v37 = vperm.slane %v414_v15, 5  ;;  %v312_v51 = vld [vmem:[%s587_s2 + $0x28] ss:$0 sm:$0xff] }
   0x6   :  { %v114_v38 = vperm.slane %v414_v15, 4  ;;  %vm128_vm3 = vcmp.lt.s32.totalorder %v395_v7, 127  ;;  %v136_v39 = vperm.slane %v409_v14, 5  ;;  %v115_v40 = vperm.slane %v409_v14, 4  ;;  %v464_v53 = vld [vmem:[%s587_s2] sm:$0xff]  ;;  %v469_v54 = vld [vmem:[%s587_s2 + $0x8] sm:$0xff] }
   0x7   :  { %v175_v56 = vperm.slane %v464_v53, 7  ;;  %v176_v57 = vperm.slane %v469_v54, 7  ;;  %vm99_vm4 = vcmp.lt.s32.totalorder %v395_v7, 1  ;;  %vm78_vm5 = vcmp.lt.s32.totalorder %v395_v7, 15 }
   0x8   :  { %v118_v46 = vmul.f32 %v114_v38, %v349_v1  ;;  %v119_v48 = vmul.f32 %v115_v40, %v344_v0  ;;  %vm57_vm6 = vcmp.lt.s32.totalorder %v395_v7, 16  ;;  %vm36_vm7 = vcmp.lt.s32.totalorder %v395_v7, 17 }
   0xa   :  { %168 = vrot.lane.b32.xlu2 %v344_v0, %s314_s19  ;;  %162 = vrot.lane.b32.xlu1 %v354_v2, %s314_s19 }
   0xb   :  { %187 = vrot.lane.b32.xlu0 %v349_v1, %s313_s18 }
  0x12   :  { %147 = vrot.lane.b32.xlu2 %v344_v0, %s315_s20  ;;  %145 = vrot.lane.b32.xlu1 %v349_v1, %s315_s20 }
  0x13   :  { %141 = vrot.lane.b32.xlu0 %v354_v2, %s315_s20 }
  0x1a   :  { %126 = vrot.lane.b32.xlu2 %v344_v0, %s316_s21  ;;  %124 = vrot.lane.b32.xlu1 %v349_v1, %s316_s21 }
  0x1b   :  { %120 = vrot.lane.b32.xlu0 %v354_v2, %s316_s21 }
  0x22   :  { %93 = vrot.lane.b32.xlu2 %v371_v3, %s317_s24  ;;  %164 = vrot.lane.b32.xlu1 %v371_v3, %s314_s19 }
  0x23   :  { %185 = vrot.lane.b32.xlu0 %v371_v3, %s313_s18 }
  0x2a   :  { %143 = vrot.lane.b32.xlu2 %v371_v3, %s315_s20  ;;  %97 = vrot.lane.b32.xlu1 %v344_v0, %s317_s24 }
  0x2b   :  { %95 = vrot.lane.b32.xlu0 %v349_v1, %s317_s24 }
  0x32   :  { %76 = vrot.lane.b32.xlu2 %v344_v0, %s318_s25  ;;  %74 = vrot.lane.b32.xlu1 %v349_v1, %s318_s25 }
  0x33   :  { %72 = vrot.lane.b32.xlu0 %v371_v3, %s318_s25 }
  0x3a   :  { %53 = vrot.lane.b32.xlu2 %v349_v1, %s319_s0  ;;  %51 = vrot.lane.b32.xlu1 %v371_v3, %s319_s0 }
  0x3b   :  { %122 = vrot.lane.b32.xlu0 %v371_v3, %s316_s21 }
  0x42   :  { %30 = vrot.lane.b32.xlu2 %v349_v1, %s320_s26  ;;  %28 = vrot.lane.b32.xlu1 %v371_v3, %s320_s26  ;;  %v155_v1 = vperm.slane %v469_v54, 6 }
  0x43   :  { %55 = vrot.lane.b32.xlu0 %v344_v0, %s319_s0 }
  0x4a   :  { %70 = vrot.lane.b32.xlu2 %v354_v2, %s318_s25  ;;  %91 = vrot.lane.b32.xlu1 %v354_v2, %s317_s24 }
  0x4b   :  { %32 = vrot.lane.b32.xlu0 %v344_v0, %s320_s26  ;;  %v154_v0 = vperm.slane %v464_v53, 6 }
  0x52   :  { %26 = vrot.lane.b32.xlu1 %v354_v2, %s320_s26 }
  0x53   :  { %49 = vrot.lane.b32.xlu0 %v354_v2, %s319_s0 }
  0x5c   :  { %v393_v4 = vpop.permute.xlu2 %166 }
  0x64   :  { %v169_v5 = vpop.permute.xlu2 %168 }
  0x65   :  { %v171_v22 = vsel %vm170_vm1, %v393_v4, %v169_v5 }
  0x66   :  { %v181_v27 = vmul.f32 %v177_v21, %v171_v22  ;;  %v86_v22 = vperm.slane %v409_v14, 2 }
  0x6c   :  { %v148_v9 = vpop.permute.xlu2 %147 }
  0x74   :  { %v190_v10 = vpop.permute.xlu1 %189  ;;  %v127_v23 = vpop.permute.xlu2 %126 }
  0x75   :  { %v401_v11 = vpop.permute.xlu0 %183 }
  0x76   :  { %v195_v12 = vsel %vm191_vm0, %v190_v10, %v401_v11 }
  0x77   :  { %v203_v13 = vmul.f32 %v309_v8, %v195_v12  ;;  %v107_v12 = vperm.slane %v409_v14, 3 }
  0x79   :  { %276 = vmatpush.msra.mxu3 %v203_v13 }
  0x7c   :  { %v163_v18 = vpop.permute.xlu1 %162  ;;  %v436_v36 = vpop.permute.xlu2 %93 }
  0x7d   :  { %v174_v19 = vsel %vm170_vm1, %v169_v5, %v163_v18  ;;  %v188_v20 = vpop.permute.xlu0 %187 }
  0x7e   :  { %v192_v24 = vsel %vm191_vm0, %v188_v20, %v190_v10  ;;  %v182_v25 = vmul.f32 %v178_v16, %v174_v19 }
  0x7f   :  { %v202_v26 = vmul.f32 %v310_v17, %v192_v24 }
  0x80   :  { %277 = vmatpush.msra.mxu3 %v182_v25 }
  0x81   :  { %256 = vmatpush.msra.mxu2 %v202_v26 }
  0x83   :  { %257 = vmatpush.msra.mxu2 %v181_v27 }
  0x84   :  { %v146_v30 = vpop.permute.xlu1 %145  ;;  %v144_v49 = vpop.permute.xlu2 %143 }
  0x85   :  { %v150_v31 = vsel %vm149_vm2, %v146_v30, %v148_v9  ;;  %v142_v32 = vpop.permute.xlu0 %141  ;;  %v151_v5 = vsel %vm149_vm2, %v144_v49, %v146_v30 }
  0x86   :  { %v153_v33 = vsel %vm149_vm2, %v148_v9, %v142_v32  ;;  %v160_v34 = vmul.f32 %v156_v28, %v150_v31  ;;  %v159_v10 = vmul.f32 %v155_v1, %v151_v5  ;;  %v64_v31 = vperm.slane %v414_v15, 1 }
  0x87   :  { %v161_v35 = vmul.f32 %v157_v29, %v153_v33  ;;  %v134_v33 = vperm.slane %v469_v54, 5 }
  0x88   :  { %258 = vmatpush.msra.mxu2 %v160_v34  ;;  %v112_v34 = vperm.slane %v464_v53, 4 }
  0x89   :  { %278 = vmatpush.msra.mxu3 %v161_v35  ;;  %v113_v35 = vperm.slane %v469_v54, 4 }
  0x8c   :  { %v443_v41 = vpop.permute.xlu1 %124  ;;  %v492_v13 = vpop.permute.xlu2 %76 }
  0x8d   :  { %v129_v42 = vsel %vm128_vm3, %v443_v41, %v127_v23  ;;  %v448_v43 = vpop.permute.xlu0 %120 }
  0x8e   :  { %v132_v44 = vsel %vm128_vm3, %v127_v23, %v448_v43  ;;  %v139_v45 = vmul.f32 %v135_v37, %v129_v42  ;;  %v85_v23 = vperm.slane %v414_v15, 2 }
  0x8f   :  { %v140_v47 = vmul.f32 %v136_v39, %v132_v44 }
  0x90   :  { %259 = vmatpush.msra.mxu2 %v139_v45 }
  0x91   :  { %279 = vmatpush.msra.mxu3 %v140_v47  ;;  %v116_v47 = vmul.f32 %v112_v34, %v354_v2 }
  0x92   :  { %260 = vmatpush.msra.mxu2 %v118_v46 }
  0x93   :  { %280 = vmatpush.msra.mxu3 %v119_v48  ;;  %v117_v48 = vmul.f32 %v113_v35, %v371_v3 }
  0x94   :  { %v165_v52 = vpop.permute.xlu1 %164  ;;  %v54_v27 = vpop.permute.xlu2 %53 }
  0x95   :  { %v186_v55 = vpop.permute.xlu0 %185  ;;  %v172_v58 = vsel %vm170_vm1, %v165_v52, %v393_v4  ;;  %v173_v59 = vsel %vm170_vm1, %v163_v18, %v165_v52  ;;  %v152_v4 = vsel %vm149_vm2, %v142_v32, %v144_v49  ;;  %v133_v32 = vperm.slane %v464_v53, 5 }
  0x96   :  { %v194_v60 = vsel %vm191_vm0, %v401_v11, %v186_v55  ;;  %v193_v61 = vsel %vm191_vm0, %v186_v55, %v188_v20  ;;  %v179_v6 = vmul.f32 %v175_v56, %v173_v59  ;;  %v180_v8 = vmul.f32 %v176_v57, %v172_v58  ;;  %v204_v55 = vld [vmem:[%s588_s1] sm:$0xff] }
  0x97   :  { %v200_v62 = vmul.f32 %v311_v50, %v194_v60  ;;  %v201_v63 = vmul.f32 %v312_v51, %v193_v61  ;;  %v158_v9 = vmul.f32 %v154_v0, %v152_v4  ;;  %v106_v11 = vperm.slane %v414_v15, 3 }
  0x98   :  { %v43_v50 = vperm.slane %v414_v15, 0  ;;  %v104_v57 = vperm.slane %v464_v53, 3  ;;  %v105_v58 = vperm.slane %v469_v54, 3  ;;  %v44_v59 = vperm.slane %v409_v14, 0 }
  0x99   :  { %216 = vmatpush.msra.mxu0 %v200_v62  ;;  %236 = vmatpush.msra.mxu1 %v201_v63  ;;  %v83_v61 = vperm.slane %v464_v53, 2  ;;  %v84_v62 = vperm.slane %v469_v54, 2 }
  0x9b   :  { %217 = vmatpush.msra.mxu0 %v179_v6  ;;  %237 = vmatpush.msra.mxu1 %v180_v8 }
  0x9c   :  { %v494_v16 = vpop.permute.xlu1 %97  ;;  %v31_v49 = vpop.permute.xlu2 %30 }
  0x9d   :  { %218 = vmatpush.msra.mxu0 %v158_v9  ;;  %238 = vmatpush.msra.mxu1 %v159_v10  ;;  %v96_v17 = vpop.permute.xlu0 %95 }
  0x9e   :  { %v100_v18 = vsel %vm99_vm4, %v96_v17, %v494_v16  ;;  %v101_v19 = vsel %vm99_vm4, %v436_v36, %v96_v17  ;;  %v41_v17 = vperm.slane %v464_v53, 0 }
  0x9f   :  { %v110_v20 = vmul.f32 %v106_v11, %v101_v19  ;;  %v111_v21 = vmul.f32 %v107_v12, %v100_v18  ;;  %v63_v12 = vperm.slane %v469_v54, 1  ;;  %v42_v18 = vperm.slane %v469_v54, 0 }
  0xa1   :  { %261 = vmatpush.msra.mxu2 %v110_v20  ;;  %281 = vmatpush.msra.mxu3 %v111_v21 }
  0xa4   :  { %v75_v24 = vpop.permute.xlu1 %74  ;;  %v71_v15 = vpop.permute.xlu2 %70 }
  0xa5   :  { %v79_v25 = vsel %vm78_vm5, %v75_v24, %v492_v13  ;;  %v73_v26 = vpop.permute.xlu0 %72  ;;  %v82_v63 = vsel %vm78_vm5, %v492_v13, %v71_v15 }
  0xa6   :  { %v80_v28 = vsel %vm78_vm5, %v73_v26, %v75_v24  ;;  %v90_v29 = vmul.f32 %v86_v22, %v79_v25  ;;  %v81_v0 = vsel %vm78_vm5, %v71_v15, %v73_v26  ;;  %v87_v10 = vmul.f32 %v83_v61, %v82_v63 }
  0xa7   :  { %v89_v30 = vmul.f32 %v85_v23, %v80_v28  ;;  %v88_v11 = vmul.f32 %v84_v62, %v81_v0 }
  0xa8   :  { %282 = vmatpush.msra.mxu3 %v90_v29 }
  0xa9   :  { %262 = vmatpush.msra.mxu2 %v89_v30 }
  0xac   :  { %v516_v37 = vpop.permute.xlu1 %51 }
  0xad   :  { %v59_v38 = vsel %vm57_vm6, %v516_v37, %v54_v27  ;;  %v123_v39 = vpop.permute.xlu0 %122 }
  0xae   :  { %v130_v40 = vsel %vm128_vm3, %v123_v39, %v443_v41  ;;  %v131_v42 = vsel %vm128_vm3, %v448_v43, %v123_v39  ;;  %v68_v44 = vmul.f32 %v64_v31, %v59_v38  ;;  %v65_v41 = vperm.slane %v409_v14, 1 }
  0xaf   :  { %v137_v45 = vmul.f32 %v133_v32, %v131_v42  ;;  %v138_v46 = vmul.f32 %v134_v33, %v130_v40 }
  0xb0   :  { %263 = vmatpush.msra.mxu2 %v68_v44 }
  0xb1   :  { %219 = vmatpush.msra.mxu0 %v137_v45  ;;  %239 = vmatpush.msra.mxu1 %v138_v46 }
  0xb3   :  { %220 = vmatpush.msra.mxu0 %v116_v47  ;;  %240 = vmatpush.msra.mxu1 %v117_v48 }
  0xb4   :  { %v29_v43 = vpop.permute.xlu1 %28 }
  0xb5   :  { %v38_v51 = vsel %vm36_vm7, %v29_v43, %v31_v49  ;;  %v56_v52 = vpop.permute.xlu0 %55 }
  0xb6   :  { %v58_v2 = vsel %vm57_vm6, %v54_v27, %v56_v52  ;;  %v47_v3 = vmul.f32 %v43_v50, %v38_v51 }
  0xb7   :  { %v69_v56 = vmul.f32 %v65_v41, %v58_v2 }
  0xb8   :  { %264 = vmatpush.msra.mxu2 %v47_v3 }
  0xb9   :  { %283 = vmatpush.msra.mxu3 %v69_v56  ;;  %299 = vmatmul.msk.f32.vlgmr.msra.gmra.mxu2 %vm205_vm8, %v204_v55 }
  0xbc   :  { %v92_v60 = vpop.permute.xlu1 %91 }
  0xbd   :  { %v102_v1 = vsel %vm99_vm4, %v92_v60, %v436_v36  ;;  %v103_v14 = vsel %vm99_vm4, %v494_v16, %v92_v60  ;;  %v33_v5 = vpop.permute.xlu0 %32  ;;  %v62_v36 = vperm.slane %v464_v53, 1 }
  0xbe   :  { %v37_v4 = vsel %vm36_vm7, %v31_v49, %v33_v5  ;;  %v108_v6 = vmul.f32 %v104_v57, %v103_v14  ;;  %v109_v8 = vmul.f32 %v105_v58, %v102_v1 }
  0xbf   :  { %v48_v9 = vmul.f32 %v44_v59, %v37_v4 }
  0xc0   :  { %221 = vmatpush.msra.mxu0 %v108_v6  ;;  %241 = vmatpush.msra.mxu1 %v109_v8 }
  0xc1   :  { %284 = vmatpush.msra.mxu3 %v48_v9 }
  0xc2   :  { %222 = vmatpush.msra.mxu0 %v87_v10  ;;  %242 = vmatpush.msra.mxu1 %v88_v11 }
  0xc3   :  { %300 = vmatmul.msk.f32.vlgmr.msra.gmra.mxu3 %vm205_vm8, %v204_v55 }
  0xc4   :  { %v27_v13 = vpop.permute.xlu1 %26 }
  0xc5   :  { %v50_v16 = vpop.permute.xlu0 %49  ;;  %v39_v19 = vsel %vm36_vm7, %v27_v13, %v29_v43  ;;  %v40_v20 = vsel %vm36_vm7, %v33_v5, %v27_v13 }
  0xc6   :  { %v60_v21 = vsel %vm57_vm6, %v50_v16, %v516_v37  ;;  %v61_v22 = vsel %vm57_vm6, %v56_v52, %v50_v16  ;;  %v45_v53 = vmul.f32 %v41_v17, %v40_v20  ;;  %v46_v25 = vmul.f32 %v42_v18, %v39_v19 }
  0xc7   :  { %v66_v23 = vmul.f32 %v62_v36, %v61_v22  ;;  %v67_v24 = vmul.f32 %v63_v12, %v60_v21 }
  0xc9   :  { %223 = vmatpush.msra.mxu0 %v66_v23  ;;  %243 = vmatpush.msra.mxu1 %v67_v24 }
  0xcb   :  { %224 = vmatpush.msra.mxu0 %v45_v53  ;;  %244 = vmatpush.msra.mxu1 %v46_v25 }
  0xcc   :  { %297 = vmatmul.msk.f32.vlgmr.msra.gmra.mxu0 %vm205_vm8, %v204_v55  ;;  %298 = vmatmul.msk.f32.vlgmr.msra.gmra.mxu1 %vm205_vm8, %v204_v55 }
 0x13c   :  { %v266_v54 = vpop.f32.mrf.mxu2 }
 0x13d   :  { %291 = vst [vmem:[%s589_s3 + $0x10] sm:$0xff] %v266_v54 }
 0x146   :  { %v286_v26 = vpop.f32.mrf.mxu3 }
 0x147   :  { %292 = vst [vmem:[%s589_s3 + $0x18] sm:$0xff] %v286_v26 }
 0x149   :  { %v226_v7 = vpop.f32.mrf.mxu0  ;;  %v246_v27 = vpop.f32.mrf.mxu1 }
 0x14a   :  { %289 = vst [vmem:[%s589_s3] sm:$0xff] %v226_v7 }
 0x14b   :  { %290 = vst [vmem:[%s589_s3 + $0x8] sm:$0xff] %v246_v27 }

// kernel: squeeze.19
= control target key start
LH: loop header
LB: loop body
LE: loop exit
PB: predicated region body
PF: predicated region fallthrough
CT: control target
= control target key end

     0   :  { %vm63_vm0 = vcmask 1047556   ;;  %s289_s14 = smov 112   ;;  %s290_s15 = smov 80   ;;  %vm19_vm1 = vcmask 130048   ;;  %s507_s0 = inlined_call_operand.vmem [shape: f32[1,4,512], index: 0, kind: input, shape index: {}]   ;;  %s508_s1 = inlined_call_operand.vmem [shape: f32[4,2,16,16], index: 1, kind: output, shape index: {}]  }
   0x1   :  { %v235_v0 = vld [vmem:[%s507_s0 + $0xc] sm:$0xf]  ;;  %v236_v1 = vld [vmem:[%s507_s0 + $0x8] sm:$0xf]  ;;  %v237_v2 = vld [vmem:[%s507_s0 + $0x4] sm:$0xf] }
   0x2   :  { %7 = vst [vmem:[#allocation0 + $0x18] sm:$0xf] %v235_v0  ;;  %v16_v3 = vld [vmem:[%s507_s0] sm:$0xf]  ;;  %s288_s0 = smov 96   ;;  %s291_s16 = smov 64  }
   0x3   :  { %11 = vst [vmem:[#allocation0 + $0x10] sm:$0xf] %v236_v1  ;;  %s292_s17 = smov 32   ;;  %s293_s18 = smov 48  }
   0x4   :  { %15 = vst [vmem:[#allocation0 + $0x8] sm:$0xf] %v237_v2  ;;  %s294_s19 = smov 16  }
   0x5   :  { %17 = vst [vmem:[#allocation0] sm:$0xf] %v16_v3 }
   0x9   :  { %v50_v63 = vld [vmem:[#allocation0 + $0x18] sm:$0xf]  }
   0xa   :  { %v39_v60 = vld [vmem:[#allocation0 + $0x10] sm:$0xf]   ;;  %249 = vst.msk [vmem:[%s508_s1 + $0x18] sm:$0x1] %vm19_vm1, %v50_v63  }
   0xb   :  { %v28_v57 = vld [vmem:[#allocation0 + $0x8] sm:$0xf]   ;;  %245 = vst.msk [vmem:[%s508_s1 + $0x10] sm:$0x1] %vm19_vm1, %v39_v60  }
   0xc   :  { %v85_v4 = vld [vmem:[#allocation0] ss:$8 sm:$0xf]   ;;  %v87_v5 = vld [vmem:[#allocation0 - $0x1f] ss:$8 sm:$0xf0]  }
   0xd   :  { %v89_v6 = vsel %vm63_vm0, %v87_v5, %v85_v4  ;;  %v60_v7 = vld [vmem:[#allocation0] ss:$8 sm:$0xf]   ;;  %v62_v8 = vld [vmem:[#allocation0 - $0x1f] ss:$8 sm:$0xf0]  }
   0xe   :  { %90 = vrot.lane.b32.xlu1 %v89_v6, %s288_s0  ;;  %v64_v9 = vsel %vm63_vm0, %v62_v8, %v60_v7  ;;  %v98_v10 = vld [vmem:[#allocation0 + $0x2] ss:$8 sm:$0xf]   ;;  %v100_v11 = vld [vmem:[#allocation0 - $0x1d] ss:$8 sm:$0xf0]  }
   0xf   :  { %65 = vrot.lane.b32.xlu0 %v64_v9, %s289_s14  ;;  %v73_v12 = vld [vmem:[#allocation0 + $0x2] ss:$8 sm:$0xf]   ;;  %v75_v13 = vld [vmem:[#allocation0 - $0x1d] ss:$8 sm:$0xf0]   ;;  %v102_v14 = vsel %vm63_vm0, %v100_v11, %v98_v10 }
  0x10   :  { %v77_v15 = vsel %vm63_vm0, %v75_v13, %v73_v12  ;;  %v110_v16 = vld [vmem:[#allocation0] ss:$8 sm:$0xf]   ;;  %v112_v17 = vld [vmem:[#allocation0 - $0x1f] ss:$8 sm:$0xf0]  }
  0x11   :  { %v114_v18 = vsel %vm63_vm0, %v112_v17, %v110_v16  ;;  %v148_v19 = vld [vmem:[#allocation0 + $0x2] ss:$8 sm:$0xf]   ;;  %v150_v20 = vld [vmem:[#allocation0 - $0x1d] ss:$8 sm:$0xf0]  }
  0x12   :  { %115 = vrot.lane.b32.xlu2 %v114_v18, %s290_s15  ;;  %v123_v21 = vld [vmem:[#allocation0 + $0x2] ss:$8 sm:$0xf]   ;;  %v125_v22 = vld [vmem:[#allocation0 - $0x1d] ss:$8 sm:$0xf0]   ;;  %v152_v25 = vsel %vm63_vm0, %v150_v20, %v148_v19 }
  0x13   :  { %v135_v23 = vld [vmem:[#allocation0] ss:$8 sm:$0xf]   ;;  %v137_v24 = vld [vmem:[#allocation0 - $0x1f] ss:$8 sm:$0xf0]   ;;  %v127_v26 = vsel %vm63_vm0, %v125_v22, %v123_v21 }
  0x14   :  { %v139_v27 = vsel %vm63_vm0, %v137_v24, %v135_v23  ;;  %v185_v28 = vld [vmem:[#allocation0] ss:$8 sm:$0xf]   ;;  %v187_v29 = vld [vmem:[#allocation0 - $0x1f] ss:$8 sm:$0xf0]  }
  0x15   :  { %v160_v30 = vld [vmem:[#allocation0] ss:$8 sm:$0xf]   ;;  %v162_v31 = vld [vmem:[#allocation0 - $0x1f] ss:$8 sm:$0xf0]   ;;  %v189_v34 = vsel %vm63_vm0, %v187_v29, %v185_v28 }
  0x16   :  { %103 = vrot.lane.b32.xlu1 %v102_v14, %s288_s0  ;;  %v173_v32 = vld [vmem:[#allocation0 + $0x2] ss:$8 sm:$0xf]   ;;  %v175_v33 = vld [vmem:[#allocation0 - $0x1d] ss:$8 sm:$0xf0]   ;;  %v164_v35 = vsel %vm63_vm0, %v162_v31, %v160_v30 }
  0x17   :  { %78 = vrot.lane.b32.xlu0 %v77_v15, %s289_s14  ;;  %v177_v36 = vsel %vm63_vm0, %v175_v33, %v173_v32  ;;  %v223_v37 = vld [vmem:[#allocation0 + $0x2] ss:$8 sm:$0xf]   ;;  %v225_v38 = vld [vmem:[#allocation0 - $0x1d] ss:$8 sm:$0xf0]  }
  0x18   :  { %v198_v39 = vld [vmem:[#allocation0 + $0x2] ss:$8 sm:$0xf]   ;;  %v200_v40 = vld [vmem:[#allocation0 - $0x1d] ss:$8 sm:$0xf0]   ;;  %v227_v43 = vsel %vm63_vm0, %v225_v38, %v223_v37 }
  0x19   :  { %v210_v41 = vld [vmem:[#allocation0] ss:$8 sm:$0xf]   ;;  %v212_v42 = vld [vmem:[#allocation0 - $0x1f] ss:$8 sm:$0xf0]   ;;  %v202_v44 = vsel %vm63_vm0, %v200_v40, %v198_v39 }
  0x1a   :  { %128 = vrot.lane.b32.xlu2 %v127_v26, %s290_s15  ;;  %v214_v45 = vsel %vm63_vm0, %v212_v42, %v210_v41  ;;  %v18_v51 = vld [vmem:[#allocation0] sm:$0xf]   ;;  %241 = vst.msk [vmem:[%s508_s1 + $0x8] sm:$0x1] %vm19_vm1, %v28_v57  }
  0x1b   :  { %20 = vst.msk [vmem:[%s508_s1] sm:$0x1] %vm19_vm1, %v18_v51  }
  0x1c   :  { %238 = vst.msk [vmem:[%s508_s1 + $0x1f] sm:$0x2] %vm19_vm1, %v18_v51  }
  0x1d   :  { %239 = vst.msk [vmem:[%s508_s1 + $0x3e] sm:$0x4] %vm19_vm1, %v18_v51  }
  0x1e   :  { %153 = vrot.lane.b32.xlu1 %v152_v25, %s291_s16  ;;  %240 = vst.msk [vmem:[%s508_s1 + $0x5d] sm:$0x8] %vm19_vm1, %v18_v51  }
  0x1f   :  { %140 = vrot.lane.b32.xlu0 %v139_v27, %s291_s16  ;;  %242 = vst.msk [vmem:[%s508_s1 + $0x27] sm:$0x2] %vm19_vm1, %v28_v57  }
  0x20   :  { %243 = vst.msk [vmem:[%s508_s1 + $0x46] sm:$0x4] %vm19_vm1, %v28_v57  }
  0x21   :  { %244 = vst.msk [vmem:[%s508_s1 + $0x65] sm:$0x8] %vm19_vm1, %v28_v57  }
  0x22   :  { %165 = vrot.lane.b32.xlu2 %v164_v35, %s293_s18  ;;  %246 = vst.msk [vmem:[%s508_s1 + $0x2f] sm:$0x2] %vm19_vm1, %v39_v60  }
  0x23   :  { %247 = vst.msk [vmem:[%s508_s1 + $0x4e] sm:$0x4] %vm19_vm1, %v39_v60  }
  0x24   :  { %248 = vst.msk [vmem:[%s508_s1 + $0x6d] sm:$0x8] %vm19_vm1, %v39_v60  }
  0x25   :  { %250 = vst.msk [vmem:[%s508_s1 + $0x37] sm:$0x2] %vm19_vm1, %v50_v63  }
  0x26   :  { %190 = vrot.lane.b32.xlu1 %v189_v34, %s292_s17  ;;  %251 = vst.msk [vmem:[%s508_s1 + $0x56] sm:$0x4] %vm19_vm1, %v50_v63  }
  0x27   :  { %178 = vrot.lane.b32.xlu0 %v177_v36, %s293_s18  ;;  %252 = vst.msk [vmem:[%s508_s1 + $0x75] sm:$0x8] %vm19_vm1, %v50_v63  }
  0x2a   :  { %203 = vrot.lane.b32.xlu2 %v202_v44, %s292_s17 }
  0x2e   :  { %228 = vrot.lane.b32.xlu1 %v227_v43, %s294_s19 }
  0x2f   :  { %215 = vrot.lane.b32.xlu0 %v214_v45, %s294_s19 }
  0x6c   :  { %v116_v46 = vpop.permute.xlu2 %115  }
  0x6d   :  { %261 = vst.msk [vmem:[%s508_s1 + $0x3] ss:$8 sm:$0xf] %vm19_vm1, %v116_v46  }
  0x6e   :  { %262 = vst.msk [vmem:[%s508_s1 + $0x3] ss:$8 sm:$0xf0] %vm19_vm1, %v116_v46  }
  0x74   :  { %v129_v47 = vpop.permute.xlu2 %128  }
  0x75   :  { %263 = vst.msk [vmem:[%s508_s1 + $0x43] ss:$8 sm:$0xf] %vm19_vm1, %v129_v47  }
  0x76   :  { %264 = vst.msk [vmem:[%s508_s1 + $0x43] ss:$8 sm:$0xf0] %vm19_vm1, %v129_v47  }
  0x7c   :  { %v166_v49 = vpop.permute.xlu2 %165  }
  0x7d   :  { %269 = vst.msk [vmem:[%s508_s1 + $0x5] ss:$8 sm:$0xf] %vm19_vm1, %v166_v49  }
  0x7e   :  { %270 = vst.msk [vmem:[%s508_s1 + $0x5] ss:$8 sm:$0xf0] %vm19_vm1, %v166_v49  }
  0x80   :  { %v91_v48 = vpop.permute.xlu1 %90  }
  0x81   :  { %257 = vst.msk [vmem:[%s508_s1 + $0x2] ss:$8 sm:$0xf] %vm19_vm1, %v91_v48   ;;  %v66_v50 = vpop.permute.xlu0 %65  }
  0x82   :  { %258 = vst.msk [vmem:[%s508_s1 + $0x2] ss:$8 sm:$0xf0] %vm19_vm1, %v91_v48  }
  0x83   :  { %253 = vst.msk [vmem:[%s508_s1 + $0x1] ss:$8 sm:$0xf] %vm19_vm1, %v66_v50  }
  0x84   :  { %254 = vst.msk [vmem:[%s508_s1 + $0x1] ss:$8 sm:$0xf0] %vm19_vm1, %v66_v50   ;;  %v204_v53 = vpop.permute.xlu2 %203  }
  0x85   :  { %275 = vst.msk [vmem:[%s508_s1 + $0x46] ss:$8 sm:$0xf] %vm19_vm1, %v204_v53  }
  0x86   :  { %276 = vst.msk [vmem:[%s508_s1 + $0x46] ss:$8 sm:$0xf0] %vm19_vm1, %v204_v53  }
  0x88   :  { %v104_v52 = vpop.permute.xlu1 %103  }
  0x89   :  { %259 = vst.msk [vmem:[%s508_s1 + $0x42] ss:$8 sm:$0xf] %vm19_vm1, %v104_v52   ;;  %v79_v54 = vpop.permute.xlu0 %78  }
  0x8a   :  { %260 = vst.msk [vmem:[%s508_s1 + $0x42] ss:$8 sm:$0xf0] %vm19_vm1, %v104_v52  }
  0x8b   :  { %255 = vst.msk [vmem:[%s508_s1 + $0x41] ss:$8 sm:$0xf] %vm19_vm1, %v79_v54  }
  0x8c   :  { %256 = vst.msk [vmem:[%s508_s1 + $0x41] ss:$8 sm:$0xf0] %vm19_vm1, %v79_v54  }
  0x90   :  { %v154_v55 = vpop.permute.xlu1 %153  }
  0x91   :  { %267 = vst.msk [vmem:[%s508_s1 + $0x44] ss:$8 sm:$0xf] %vm19_vm1, %v154_v55   ;;  %v141_v56 = vpop.permute.xlu0 %140  }
  0x92   :  { %268 = vst.msk [vmem:[%s508_s1 + $0x44] ss:$8 sm:$0xf0] %vm19_vm1, %v154_v55  }
  0x93   :  { %265 = vst.msk [vmem:[%s508_s1 + $0x4] ss:$8 sm:$0xf] %vm19_vm1, %v141_v56  }
  0x94   :  { %266 = vst.msk [vmem:[%s508_s1 + $0x4] ss:$8 sm:$0xf0] %vm19_vm1, %v141_v56  }
  0x98   :  { %v191_v58 = vpop.permute.xlu1 %190  }
  0x99   :  { %273 = vst.msk [vmem:[%s508_s1 + $0x6] ss:$8 sm:$0xf] %vm19_vm1, %v191_v58   ;;  %v179_v59 = vpop.permute.xlu0 %178  }
  0x9a   :  { %274 = vst.msk [vmem:[%s508_s1 + $0x6] ss:$8 sm:$0xf0] %vm19_vm1, %v191_v58  }
  0x9b   :  { %271 = vst.msk [vmem:[%s508_s1 + $0x45] ss:$8 sm:$0xf] %vm19_vm1, %v179_v59  }
  0x9c   :  { %272 = vst.msk [vmem:[%s508_s1 + $0x45] ss:$8 sm:$0xf0] %vm19_vm1, %v179_v59  }
  0xa0   :  { %v229_v61 = vpop.permute.xlu1 %228  }
  0xa1   :  { %279 = vst.msk [vmem:[%s508_s1 + $0x47] ss:$8 sm:$0xf] %vm19_vm1, %v229_v61   ;;  %v216_v62 = vpop.permute.xlu0 %215  }
  0xa2   :  { %280 = vst.msk [vmem:[%s508_s1 + $0x47] ss:$8 sm:$0xf0] %vm19_vm1, %v229_v61  }
  0xa3   :  { %277 = vst.msk [vmem:[%s508_s1 + $0x7] ss:$8 sm:$0xf] %vm19_vm1, %v216_v62  }
  0xa4   :  { %278 = vst.msk [vmem:[%s508_s1 + $0x7] ss:$8 sm:$0xf0] %vm19_vm1, %v216_v62  }

// kernel: afsi_forward.3
= control target key start
LH: loop header
LB: loop body
LE: loop exit
PB: predicated region body
PF: predicated region fallthrough
CT: control target
= control target key end

     0   :  { %s2425_s24 = smov 0   ;;  %s3405_s0 = inlined_call_operand.vmem [shape: f32[2,8,512], index: 0, kind: input, shape index: {}]   ;;  %s3406_s1 = inlined_call_operand.vmem [shape: f32[2,4,512], index: 1, kind: input, shape index: {}]   ;;  %s3407_s2 = inlined_call_operand.vmem [shape: f32[9,512], index: 2, kind: input, shape index: {}]   ;;  %s3408_s3 = inlined_call_operand.vmem [shape: f32[8,8], index: 3, kind: input, shape index: {}]   ;;  %s3409_s4 = inlined_call_operand.vmem [shape: f32[2,4,8], index: 4, kind: input, shape index: {}]   ;;  %s3410_s5 = inlined_call_operand.vmem [shape: f32[2,4,1], index: 5, kind: input, shape index: {}]   ;;  %s3411_s6 = inlined_call_operand.vmem [shape: f32[2,4,4], index: 6, kind: input, shape index: {}]   ;;  %s3412_s7 = inlined_call_operand.vmem [shape: f32[2,4,1], index: 7, kind: input, shape index: {}]   ;;  %s3413_s8 = inlined_call_operand.vmem [shape: f32[2,4,9], index: 8, kind: input, shape index: {}]   ;;  %s3414_s9 = inlined_call_operand.vmem [shape: f32[2,4,1], index: 9, kind: input, shape index: {}]   ;;  %s3415_s10 = inlined_call_operand.vmem [shape: f32[2,8,4], index: 10, kind: input, shape index: {}]   ;;  %s3416_s11 = inlined_call_operand.vmem [shape: f32[2,8,1], index: 11, kind: input, shape index: {}]   ;;  %s3417_s12 = inlined_call_operand.vmem [shape: f32[2,8,9], index: 12, kind: input, shape index: {}]   ;;  %s3418_s13 = inlined_call_operand.vmem [shape: f32[2,8,1], index: 13, kind: input, shape index: {}]   ;;  %s3419_s14 = inlined_call_operand.vmem [shape: f32[2,4,4], index: 14, kind: input, shape index: {}]   ;;  %s3420_s15 = inlined_call_operand.vmem [shape: f32[2,4,1], index: 15, kind: input, shape index: {}]   ;;  %s3421_s16 = inlined_call_operand.vmem [shape: f32[2,8,1], index: 16, kind: input, shape index: {}]   ;;  %s3422_s17 = inlined_call_operand.vmem [shape: f32[2,4,512], index: 17, kind: output, shape index: {}]  }
   0x1   :  { %3463 = sst [smem:[#allocation24_spill]] %s3405_s0 }
   0x2   :  { %3464 = sst [smem:[#allocation25_spill]] %s3406_s1 }
   0x3 LB: > { %s2194_s25 = sadd.s32 4294967295, %s2316_s24   ;;  %p2198_p0 = scmp.ge.s32.totalorder %s2316_s24, 1  ;;  %s2316_s24 = sphi %s2425_s24, %s27_s24  }
   0x4   : > { %p614_p1 = scmp.lt.s32.totalorder %s2316_s24, 3 }
   0x6   : > { %p615_p2 = pnand %p2198_p0, %p614_p1 }
   0x8   : > { %618 = sbr.rel (%p615_p2) target bundleno = 1423 (0x58f), region = 88 }
   0xd   : > { %p723_p3 = scmp.lt.s32.totalorder %s2194_s25, 1  ;;  %v2318_v0 = vmov 1   ;;  %v3424_v1 = vmov 0   ;;  %s3465_s19 = sld [smem:[#allocation24_spill]]  ;;  %vm811_vm0 = vcmask 64512   ;;  %v2320_v14 = vmov 2  }
   0xe   : > { %2280 = vset.pattern.permute.xlu0 %v2318_v0  ;;  %2278 = vset.pattern.permute.xlu1 %v3424_v1  ;;  %s3466_s28 = sld [smem:[#allocation25_spill]]  ;;  %v2321_v16 = vmov 4   ;;  %v2322_v17 = vmov 3   ;;  %vm906_vm1 = vcmask 1043456   ;;  %v2323_v20 = vmov 5   ;;  %v2538_v40 = vld [vmem:[%s3407_s2] sm:$0xff] }
   0xf   : > { %s3533_s25 = smov (!%p723_p3, %s2194_s25), 1  ;;  %2279 = vset.pattern.permute.xlu2 %v3424_v1  ;;  %vm902_vm2 = vcmask 31744   ;;  %v2324_v33 = vmov 6   ;;  %v2325_v35 = vmov 8   ;;  %v2326_v36 = vmov 7   ;;  %s2327_s30 = smov 16  }
  0x10   : > { %s2438_s26 = sshll.u32 %s3533_s25, 3  ;;  %s2250_s27 = sshll.u32 %s3533_s25, 5  ;;  %v3423_v42 = vperm.slane %v2538_v40, 4 }
  0x11   : > { %s768_s0 = scalar_lea.vmem %s3417_s12, %s2438_s26  ;;  %s2451_s20 = sshll.u32 %s3533_s25, 2 }
  0x12   : > { %v2448_v2 = vld [vmem:[%s768_s0] sm:$0xff]  ;;  %s736_s23 = scalar_lea.vmem %s3409_s4, %s2451_s20  ;;  %s740_s29 = scalar_lea.vmem %s3410_s5, %s2451_s20 }
  0x13   : > { %s727_s1 = scalar_lea.vmem %s3465_s19, %s2250_s27  ;;  %1452 = vperm.xlu0 %2280, %v2448_v2   ;;  %v804_v7 = vld [vmem:[%s736_s23] sm:$0xf]  ;;  %1424 = vperm.xlu2 %2279, %v2448_v2   ;;  %s764_s18 = scalar_lea.vmem %s3416_s11, %s2438_s26 }
  0x14   : > { %v790_v3 = vld [vmem:[%s727_s1] sm:$0xff]  ;;  %v791_v4 = vld [vmem:[%s727_s1 + $0x8] sm:$0xff]  ;;  %v792_v5 = vld [vmem:[%s727_s1 + $0x10] sm:$0xff]  ;;  %s752_s21 = scalar_lea.vmem %s3413_s8, %s2451_s20  ;;  %s2251_s22 = sshll.u32 %s3533_s25, 4 }
  0x15   : > { %830 = vmatpush.msra.mxu0 %v790_v3  ;;  %v793_v6 = vld [vmem:[%s727_s1 + $0x18] sm:$0xff]  ;;  %850 = vmatpush.msra.mxu1 %v791_v4  ;;  %v805_v8 = vld [vmem:[%s740_s29] sm:$0xf]  ;;  %s732_s29 = scalar_lea.vmem %s3466_s28, %s2251_s22  ;;  %s760_s28 = scalar_lea.vmem %s3415_s10, %s2438_s26 }
  0x16   : > { %870 = vmatpush.msra.mxu2 %v792_v5  ;;  %890 = vmatpush.msra.mxu3 %v793_v6  ;;  %v1298_v9 = vld [vmem:[%s764_s18] sm:$0xff]  ;;  %s748_s18 = scalar_lea.vmem %s3412_s7, %s2451_s20  ;;  %v795_v12 = vld [vmem:[%s732_s29 + $0x8] sm:$0xff]  ;;  %s2329_s19 = smov 15  }
  0x17   : > { %2218 = vmatmul.msk.f32.vlgmr.msra.gmra.mxu0 %vm811_vm0, %v804_v7  ;;  %2219 = vmatmul.msk.f32.vlgmr.msra.gmra.mxu1 %vm811_vm0, %v804_v7  ;;  %v2476_v10 = vld [vmem:[%s752_s21] sm:$0xf]  ;;  %1308 = vst [vmem:[#allocation1 + $0x10] ss:$2 sm:$0xff] %v795_v12  ;;  %s744_s21 = scalar_lea.vmem %s3411_s6, %s2451_s20  ;;  %s2330_s1 = smov 113  }
  0x18   : > { %2220 = vmatmul.msk.f32.vlgmr.msra.gmra.mxu2 %vm811_vm0, %v804_v7  ;;  %2221 = vmatmul.msk.f32.vlgmr.msra.gmra.mxu3 %vm811_vm0, %v804_v7  ;;  %v794_v11 = vld [vmem:[%s732_s29] sm:$0xff]  ;;  %s2332_s23 = smov 1   ;;  %s2333_s27 = smov 112  }
  0x19   : > { %1306 = vst [vmem:[#allocation1] ss:$2 sm:$0xff] %v794_v11  ;;  %v896_v13 = vld [vmem:[%s748_s18] sm:$0xf]  ;;  %s2328_s18 = smov 17   ;;  %s784_s29 = scalar_lea.vmem %s3421_s16, %s2438_s26 }
  0x1a   : > { %899 = vperm.xlu1 %2278, %v896_v13   ;;  %v895_v23 = vld [vmem:[%s744_s21] sm:$0xf]  ;;  %s2331_s21 = smov 127   ;;  %s789_s0 = scalar_lea.vmem %s3422_s17, %s2251_s22 }
  0x1b   : > { %2281 = vset.pattern.permute.xlu0 %v3424_v1  ;;  %2282 = vset.pattern.permute.xlu2 %v2320_v14  ;;  %v1297_v31 = vld [vmem:[%s760_s28] sm:$0xff]  ;;  %s2334_s28 = smov 111  }
  0x1c   : > { %808 = vperm.xlu0 %2281, %v805_v8   ;;  %1480 = vperm.xlu2 %2282, %v2448_v2  }
  0x1e   : > { %v1311_v32 = vld.sshfl [vmem:[#allocation1 + $0x10] sm:$0xff pattern:$0x75316420]  ;;  %v1312_v34 = vld.sshfl [vmem:[#allocation1 + $0x18] sm:$0xff pattern:$0x75316420] }
  0x20   : > { %v1309_v25 = vld.sshfl [vmem:[#allocation1] sm:$0xff pattern:$0x75316420]  ;;  %v1310_v26 = vld.sshfl [vmem:[#allocation1 + $0x8] sm:$0xff pattern:$0x75316420] }
  0x22   : > { %2283 = vset.pattern.permute.xlu1 %v2318_v0 }
  0x23   : > { %1059 = vperm.xlu1 %2283, %v2476_v10  }
  0x24   : > { %1301 = vperm.xlu0 %2281, %v1298_v9   ;;  %2284 = vset.pattern.permute.xlu2 %v2322_v17  ;;  %v1009_v9 = vlaneseq }
  0x25   : > { %1508 = vperm.xlu2 %2284, %v2448_v2  }
  0x26   : > { %v2666_v13 = vand.u32 127, %v1009_v9 }
  0x28   : > { %vm1045_vm3 = vcmp.lt.s32.totalorder %v2666_v13, 16  ;;  %vm1011_vm4 = vcmp.lt.s32.totalorder %v2666_v13, 17  ;;  %vm1078_vm5 = vcmp.lt.s32.totalorder %v2666_v13, 15  ;;  %vm1111_vm6 = vcmp.lt.s32.totalorder %v2666_v13, 1 }
  0x29   : > { %vm1164_vm7 = vcmp.lt.s32.totalorder %v2666_v13, 127  ;;  %vm1230_vm8 = vcmp.lt.s32.totalorder %v2666_v13, 112  ;;  %vm1197_vm9 = vcmp.lt.s32.totalorder %v2666_v13, 113  ;;  %vm1263_vm10 = vcmp.lt.s32.totalorder %v2666_v13, 111 }
  0x2b   : > { %2287 = vset.pattern.permute.xlu1 %v2322_v17 }
  0x2c   : > { %1026 = vperm.xlu0 %2281, %v2476_v10   ;;  %1125 = vperm.xlu1 %2287, %v2476_v10  }
  0x2d   : > { %2289 = vset.pattern.permute.xlu2 %v2321_v16 }
  0x2e   : > { %1145 = vperm.xlu2 %2289, %v2476_v10  }
  0x34   : > { %2285 = vset.pattern.permute.xlu0 %v2320_v14  ;;  %2288 = vset.pattern.permute.xlu1 %v2323_v20 }
  0x35   : > { %1092 = vperm.xlu0 %2285, %v2476_v10   ;;  %1552 = vperm.xlu1 %2288, %v2448_v2  }
  0x36   : > { %2290 = vset.pattern.permute.xlu2 %v2324_v33 }
  0x37   : > { %1580 = vperm.xlu2 %2290, %v2448_v2  }
  0x3d   : > { %2286 = vset.pattern.permute.xlu0 %v2321_v16  ;;  %2292 = vset.pattern.permute.xlu1 %v2326_v36  ;;  %v2674_v16 = vld [vmem:[%s3407_s2 + $0x8] sm:$0xff] }
  0x3e   : > { %1524 = vperm.xlu0 %2286, %v2448_v2   ;;  %1608 = vperm.xlu1 %2292, %v2448_v2   ;;  %v3428_v17 = vperm.slane %v2674_v16, 1  ;;  %v3425_v33 = vperm.slane %v2674_v16, 4 }
  0x3f   : > { %1211 = vperm.xlu2 %2290, %v2476_v10  }
  0x46   : > { %2291 = vset.pattern.permute.xlu0 %v2323_v20  ;;  %2295 = vset.pattern.permute.xlu1 %v3424_v1 }
  0x47   : > { %1178 = vperm.xlu0 %2291, %v2476_v10   ;;  %2293 = vset.pattern.permute.xlu2 %v2325_v35 }
  0x48   : > { %1636 = vperm.xlu2 %2293, %v2448_v2  }
  0x4f   : > { %2294 = vset.pattern.permute.xlu0 %v2326_v36 }
  0x6d   : > { %v2529_v37 = vpop.permute.xlu2 %1424 }
  0x76   : > { %v2531_v38 = vpop.permute.xlu2 %1480 }
  0x77   : > { %3467 = vst [vmem:[#allocation3_spill] sm:$0xff] %v2531_v38 }
  0x7f   : > { %v2533_v39 = vpop.permute.xlu2 %1508 }
  0x80   : > { %3468 = vst [vmem:[#allocation4_spill] sm:$0xff] %v2533_v39 }
  0x85   : > { %v2491_v15 = vpop.permute.xlu0 %1452 }
  0x88   : > { %v2543_v47 = vpop.permute.xlu2 %1145 }
  0x8c   : > { %v900_v41 = vpop.permute.xlu1 %899 }
  0x8e   : > { %v809_v18 = vpop.permute.xlu0 %808 }
  0x91   : > { %v2600_v57 = vpop.permute.xlu2 %1580 }
  0x92   : > { %3470 = vst [vmem:[#allocation6_spill] sm:$0xff] %v2600_v57 }
  0x94   : > { %v832_v19 = vpop.f32.mrf.mxu0  ;;  %v852_v22 = vpop.f32.mrf.mxu1 }
  0x95   : > { %v833_v21 = vadd.f32 %v832_v19, %v809_v18  ;;  %v853_v24 = vadd.f32 %v852_v22, %v809_v18  ;;  %v2616_v59 = vpop.permute.xlu1 %1059 }
  0x96   : > { %v2559_v51 = vpop.permute.xlu0 %1301 }
  0x97   : > { %2222 = vmatpush.msk.msrb.mxu0 %vm906_vm1, %v833_v21  ;;  %2224 = vmatpush.msk.msrb.mxu1 %vm906_vm1, %v853_v24 }
  0x98   : > { %2223 = vmatmul.msk.f32.vlgmr.msrb.gmra.mxu0 %vm902_vm2, %v895_v23  ;;  %2225 = vmatmul.msk.f32.vlgmr.msrb.gmra.mxu1 %vm902_vm2, %v895_v23 }
  0x99   : > { %2230 = vmatpush.msk.msra.mxu0 %vm906_vm1, %v1309_v25  ;;  %2232 = vmatpush.msk.msra.mxu1 %vm906_vm1, %v1310_v26  ;;  %v2608_v58 = vpop.permute.xlu2 %1211 }
  0x9b   : > { %v872_v27 = vpop.f32.mrf.mxu2  ;;  %v892_v29 = vpop.f32.mrf.mxu3 }
  0x9c   : > { %v873_v28 = vadd.f32 %v872_v27, %v809_v18  ;;  %v893_v30 = vadd.f32 %v892_v29, %v809_v18  ;;  %v1017_v18 = vperm.slane %v2674_v16, 0 }
  0x9e   : > { %2226 = vmatpush.msk.msrb.mxu2 %vm906_vm1, %v873_v28  ;;  %2228 = vmatpush.msk.msrb.mxu3 %vm906_vm1, %v893_v30  ;;  %v2618_v61 = vpop.permute.xlu0 %1026  ;;  %v2630_v0 = vpop.permute.xlu1 %1125 }
  0x9f   : > { %2227 = vmatmul.msk.f32.vlgmr.msrb.gmra.mxu2 %vm902_vm2, %v895_v23  ;;  %2229 = vmatmul.msk.f32.vlgmr.msrb.gmra.mxu3 %vm902_vm2, %v895_v23 }
  0xa0   : > { %2231 = vmatmul.msk.f32.vlgmr.msra.gmra.mxu0 %vm902_vm2, %v1297_v31  ;;  %2233 = vmatmul.msk.f32.vlgmr.msra.gmra.mxu1 %vm902_vm2, %v1297_v31 }
  0xa1   : > { %2234 = vmatpush.msk.msra.mxu2 %vm906_vm1, %v1311_v32  ;;  %2236 = vmatpush.msk.msra.mxu3 %vm906_vm1, %v1312_v34  ;;  %v3427_v32 = vperm.slane %v2674_v16, 3 }
  0xa2   : > { %v2628_v63 = vpop.permute.xlu2 %1636 }
  0xa3   : > { %3471 = vst [vmem:[#allocation7_spill] sm:$0xff] %v2628_v63 }
  0xa7   : > { %2235 = vmatmul.msk.f32.vlgmr.msra.gmra.mxu2 %vm902_vm2, %v1297_v31  ;;  %2237 = vmatmul.msk.f32.vlgmr.msra.gmra.mxu3 %vm902_vm2, %v1297_v31  ;;  %v2632_v2 = vpop.permute.xlu0 %1092  ;;  %v2642_v4 = vpop.permute.xlu1 %1552  ;;  %v3426_v31 = vperm.slane %v2674_v16, 2 }
  0xb0   : > { %v2644_v5 = vpop.permute.xlu0 %1524  ;;  %v2658_v7 = vpop.permute.xlu1 %1608 }
  0xb1   : > { %3472 = vst [vmem:[#allocation8_spill] sm:$0xff] %v2644_v5 }
  0xb2   : > { %3473 = vst [vmem:[#allocation9_spill] sm:$0xff] %v2658_v7 }
  0xb9   : > { %v2660_v8 = vpop.permute.xlu0 %1178 }
 0x115   : > { %v936_v43 = vpop.f32.mrf.mxu0  ;;  %v956_v45 = vpop.f32.mrf.mxu1 }
 0x116   : > { %v937_v44 = vadd.f32 %v936_v43, %v900_v41  ;;  %v2541_v46 = vadd.f32 %v956_v45, %v900_v41 }
 0x118   : > { %1037 = vrot.lane.b32.xlu1 %v937_v44, %s2327_s30  ;;  %1001 = vrot.lane.b32.xlu0 %v937_v44, %s2328_s18  ;;  %v1140_v48 = vmul.f32 %v3423_v42, %v937_v44 }
 0x119   : > { %1003 = vrot.lane.b32.xlu2 %v2541_v46, %s2328_s18 }
 0x11a   : > { %v2552_v49 = vmul.f32 %v2543_v47, %v1140_v48  ;;  %v1141_v48 = vmul.f32 %v3425_v33, %v2541_v46 }
 0x11d   : > { %v1361_v50 = vpop.f32.mrf.mxu1  ;;  %v1341_v53 = vpop.f32.mrf.mxu0 }
 0x11e   : > { %v2562_v52 = vadd.f32 %v1361_v50, %v2559_v51  ;;  %v2570_v54 = vadd.f32 %v1341_v53, %v2559_v51 }
 0x120   : > { %1070 = vrot.lane.b32.xlu1 %v937_v44, %s2329_s19  ;;  %1191 = vrot.lane.b32.xlu0 %v2541_v46, %s2330_s1  ;;  %3469 = vst [vmem:[#allocation5_spill] sm:$0xff] %v2570_v54 }
 0x121   : > { %1039 = vrot.lane.b32.xlu2 %v2541_v46, %s2327_s30 }
 0x122   : > { %v976_v55 = vpop.f32.mrf.mxu2  ;;  %v996_v60 = vpop.f32.mrf.mxu3 }
 0x123   : > { %v2587_v56 = vadd.f32 %v976_v55, %v900_v41  ;;  %v2620_v62 = vadd.f32 %v996_v60, %v900_v41  ;;  %v1149_v55 = vmul.f32 %v2543_v47, %v1141_v48 }
 0x128   : > { %1156 = vrot.lane.b32.xlu1 %v937_v44, %s2331_s21  ;;  %1437 = vrot.lane.b32.xlu0 %v2562_v52, %s2327_s30 }
 0x129   : > { %1072 = vrot.lane.b32.xlu2 %v2541_v46, %s2329_s19 }
 0x12a   : > { %v1381_v11 = vpop.f32.mrf.mxu2  ;;  %v1401_v21 = vpop.f32.mrf.mxu3 }
 0x12b   : > { %v2669_v14 = vadd.f32 %v1381_v11, %v2559_v51  ;;  %v2705_v27 = vadd.f32 %v1401_v21, %v2559_v51 }
 0x12d   : > { %3474 = vst [vmem:[#allocation10_spill] sm:$0xff] %v2669_v14 }
 0x12e   : > { %3475 = vst [vmem:[#allocation11_spill] sm:$0xff] %v2705_v27 }
 0x130   : > { %1158 = vrot.lane.b32.xlu1 %v2541_v46, %s2331_s21  ;;  %1406 = vrot.lane.b32.xlu0 %v2570_v54, %s2328_s18 }
 0x131   : > { %1105 = vrot.lane.b32.xlu2 %v2541_v46, %s2332_s23 }
 0x138   : > { %1222 = vrot.lane.b32.xlu1 %v937_v44, %s2333_s27  ;;  %1565 = vrot.lane.b32.xlu0 %v2562_v52, %s2330_s1 }
 0x139   : > { %1103 = vrot.lane.b32.xlu2 %v937_v44, %s2332_s23 }
 0x140   : > { %1224 = vrot.lane.b32.xlu1 %v2541_v46, %s2333_s27  ;;  %1621 = vrot.lane.b32.xlu0 %v2562_v52, %s2334_s28 }
 0x141   : > { %1189 = vrot.lane.b32.xlu2 %v937_v44, %s2330_s1 }
 0x148   : > { %1408 = vrot.lane.b32.xlu1 %v2562_v52, %s2328_s18  ;;  %1005 = vrot.lane.b32.xlu0 %v2587_v56, %s2328_s18 }
 0x149   : > { %1255 = vrot.lane.b32.xlu2 %v937_v44, %s2334_s28 }
 0x150   : > { %1435 = vrot.lane.b32.xlu1 %v2570_v54, %s2327_s30  ;;  %1041 = vrot.lane.b32.xlu0 %v2587_v56, %s2327_s30 }
 0x151   : > { %1465 = vrot.lane.b32.xlu2 %v2562_v52, %s2329_s19 }
 0x158   : > { %1463 = vrot.lane.b32.xlu1 %v2570_v54, %s2329_s19  ;;  %1074 = vrot.lane.b32.xlu0 %v2587_v56, %s2329_s19 }
 0x159   : > { %1493 = vrot.lane.b32.xlu2 %v2562_v52, %s2332_s23 }
 0x160   : > { %1535 = vrot.lane.b32.xlu1 %v2570_v54, %s2331_s21  ;;  %1107 = vrot.lane.b32.xlu0 %v2587_v56, %s2332_s23 }
 0x161   : > { %1491 = vrot.lane.b32.xlu2 %v2570_v54, %s2332_s23 }
 0x168   : > { %1563 = vrot.lane.b32.xlu1 %v2570_v54, %s2330_s1  ;;  %1162 = vrot.lane.b32.xlu0 %v2620_v62, %s2331_s21 }
 0x169   : > { %1537 = vrot.lane.b32.xlu2 %v2562_v52, %s2331_s21 }
 0x170   : > { %1591 = vrot.lane.b32.xlu1 %v2570_v54, %s2333_s27  ;;  %1193 = vrot.lane.b32.xlu0 %v2587_v56, %s2330_s1 }
 0x171   : > { %1619 = vrot.lane.b32.xlu2 %v2570_v54, %s2334_s28 }
 0x173   : > { %v2640_v3 = vpop.permute.xlu2 %1003 }
 0x178   : > { %1593 = vrot.lane.b32.xlu1 %v2562_v52, %s2333_s27  ;;  %1228 = vrot.lane.b32.xlu0 %v2620_v62, %s2333_s27 }
 0x179   : > { %1160 = vrot.lane.b32.xlu2 %v2587_v56, %s2331_s21 }
 0x17b   : > { %v2652_v6 = vpop.permute.xlu2 %1039 }
 0x180   : > { %1007 = vrot.lane.b32.xlu1 %v2620_v62, %s2328_s18  ;;  %1259 = vrot.lane.b32.xlu0 %v2587_v56, %s2334_s28 }
 0x181   : > { %1226 = vrot.lane.b32.xlu2 %v2587_v56, %s2333_s27 }
 0x183   : > { %v2664_v12 = vpop.permute.xlu2 %1072 }
 0x188   : > { %1043 = vrot.lane.b32.xlu1 %v2620_v62, %s2327_s30  ;;  %1467 = vrot.lane.b32.xlu0 %v2669_v14, %s2329_s19 }
 0x189   : > { %1410 = vrot.lane.b32.xlu2 %v2669_v14, %s2328_s18 }
 0x18a   : > { %v2686_v19 = vpop.permute.xlu1 %1037  ;;  %v2688_v20 = vpop.permute.xlu0 %1001 }
 0x18b   : > { %v2690_v22 = vpop.permute.xlu2 %1105  ;;  %v1048_v23 = vsel %vm1045_vm3, %v2686_v19, %v2652_v6  ;;  %v1014_v24 = vsel %vm1011_vm4, %v2688_v20, %v2640_v3 }
 0x18c   : > { %v1055_v25 = vmul.f32 %v3428_v17, %v1048_v23  ;;  %v1021_v26 = vmul.f32 %v1017_v18, %v1014_v24 }
 0x18e   : > { %v1063_v28 = vmul.f32 %v2616_v59, %v1055_v25  ;;  %v1030_v29 = vmul.f32 %v2618_v61, %v1021_v26 }
 0x190   : > { %v1067_v30 = vadd.f32 %v1063_v28, %v1030_v29  ;;  %1076 = vrot.lane.b32.xlu1 %v2620_v62, %s2329_s19  ;;  %1569 = vrot.lane.b32.xlu0 %v2705_v27, %s2330_s1 }
 0x191   : > { %1412 = vrot.lane.b32.xlu2 %v2705_v27, %s2328_s18  ;;  %s772_s18 = scalar_lea.vmem %s3418_s13, %s2438_s26 }
 0x192   : > { %v2720_v34 = vpop.permute.xlu1 %1070  ;;  %v2722_v35 = vpop.permute.xlu0 %1191 }
 0x193   : > { %v2724_v36 = vpop.permute.xlu2 %1103  ;;  %v1081_v41 = vsel %vm1078_vm5, %v2720_v34, %v2664_v12 }
 0x194   : > { %v1114_v43 = vsel %vm1111_vm6, %v2724_v36, %v2690_v22  ;;  %v1088_v44 = vmul.f32 %v3426_v31, %v1081_v41 }
 0x195   : > { %v1121_v45 = vmul.f32 %v3427_v32, %v1114_v43 }
 0x196   : > { %v1096_v50 = vmul.f32 %v2632_v2, %v1088_v44 }
 0x197   : > { %v1129_v51 = vmul.f32 %v2630_v0, %v1121_v45 }
 0x198   : > { %v1100_v53 = vadd.f32 %v1096_v50, %v1067_v30  ;;  %1109 = vrot.lane.b32.xlu1 %v2620_v62, %s2332_s23  ;;  %1597 = vrot.lane.b32.xlu0 %v2705_v27, %s2333_s27 }
 0x199   : > { %1441 = vrot.lane.b32.xlu2 %v2705_v27, %s2327_s30 }
 0x19a   : > { %v1133_v60 = vadd.f32 %v1129_v51, %v1100_v53  ;;  %v2750_v9 = vpop.permute.xlu1 %1156  ;;  %v2752_v11 = vpop.permute.xlu0 %1437 }
 0x19b   : > { %3476 = vst [vmem:[#allocation12_spill] sm:$0xff] %v2752_v11  ;;  %v2754_v21 = vpop.permute.xlu2 %1189 }
 0x19c   : > { %v2756_v23 = vadd.f32 %v1149_v55, %v1133_v60  ;;  %v2821_v60 = vld [vmem:[%s3407_s2 + $0x10] sm:$0xff] }
 0x19d   : > { %v3431_v42 = vperm.slane %v2821_v60, 0 }
 0x1a0   : > { %1195 = vrot.lane.b32.xlu1 %v2620_v62, %s2330_s1  ;;  %1244 = vperm.xlu0 %2294, %v2476_v10  }
 0x1a1   : > { %1497 = vrot.lane.b32.xlu2 %v2705_v27, %s2332_s23 }
 0x1a2   : > { %v2764_v24 = vpop.permute.xlu1 %1158  ;;  %v2766_v25 = vpop.permute.xlu0 %1406 }
 0x1a3   : > { %v2768_v26 = vpop.permute.xlu2 %1255  ;;  %v2774_v28 = vsel %vm1164_vm7, %v2750_v9, %v2764_v24 }
 0x1a4   : > { %3477 = vst [vmem:[#allocation13_spill] sm:$0xff] %v2768_v26 }
 0x1a8   : > { %1261 = vrot.lane.b32.xlu1 %v2620_v62, %s2334_s28  ;;  %2297 = vset.pattern.permute.xlu0 %v3424_v1 }
 0x1a9   : > { %1539 = vrot.lane.b32.xlu2 %v2669_v14, %s2331_s21 }
 0x1aa   : > { %v2781_v29 = vpop.permute.xlu1 %1222  ;;  %v2783_v30 = vpop.permute.xlu0 %1565 }
 0x1ab   : > { %v2785_v41 = vpop.permute.xlu2 %1465 }
 0x1ac   : > { %3478 = vst [vmem:[#allocation14_spill] sm:$0xff] %v2785_v41 }
 0x1b0   : > { %1439 = vrot.lane.b32.xlu1 %v2669_v14, %s2327_s30 }
 0x1b1   : > { %1567 = vrot.lane.b32.xlu2 %v2669_v14, %s2330_s1 }
 0x1b2   : > { %v2792_v43 = vpop.permute.xlu1 %1224  ;;  %v2794_v44 = vpop.permute.xlu0 %1621 }
 0x1b3   : > { %3479 = vst [vmem:[#allocation15_spill] sm:$0xff] %v2794_v44  ;;  %v2796_v45 = vpop.permute.xlu2 %1493  ;;  %v2802_v48 = vsel %vm1230_vm8, %v2781_v29, %v2792_v43 }
 0x1b4   : > { %3480 = vst [vmem:[#allocation16_spill] sm:$0xff] %v2796_v45 }
 0x1b5   : > { %3481 = vst [vmem:[#allocation17_spill] sm:$0xff] %v2802_v48 }
 0x1b8   : > { %1469 = vrot.lane.b32.xlu1 %v2705_v27, %s2329_s19 }
 0x1b9   : > { %1595 = vrot.lane.b32.xlu2 %v2669_v14, %s2333_s27  ;;  %s776_s27 = scalar_lea.vmem %s3419_s14, %s2451_s20 }
 0x1ba   : > { %v2808_v50 = vpop.permute.xlu1 %1408  ;;  %v2810_v51 = vpop.permute.xlu0 %1005 }
 0x1bb   : > { %v2812_v53 = vpop.permute.xlu2 %1491  ;;  %v1013_v55 = vsel %vm1011_vm4, %v2640_v3, %v2810_v51  ;;  %v1416_v1 = vsel %vm1011_vm4, %v2766_v25, %v2808_v50 }
 0x1bc   : > { %v1419_v3 = vmul.f32 %v1416_v1, %v1017_v18  ;;  %v1022_v31 = vmul.f32 %v3431_v42, %v1013_v55  ;;  %v3482_v1 = vperm.slane %v2674_v16, 1  ;;  %v3483_v55 = vperm.slane %v2821_v60, 1 }
 0x1be   : > { %v1428_v54 = vmul.f32 %v2529_v37, %v1419_v3  ;;  %v1031_v26 = vmul.f32 %v2618_v61, %v1022_v31 }
 0x1c0   : > { %1495 = vrot.lane.b32.xlu1 %v2669_v14, %s2332_s23 }
 0x1c1   : > { %1625 = vrot.lane.b32.xlu2 %v2705_v27, %s2334_s28 }
 0x1c2   : > { %v2837_v32 = vpop.permute.xlu1 %1435  ;;  %v2839_v17 = vpop.permute.xlu0 %1041 }
 0x1c3   : > { %v2841_v63 = vpop.permute.xlu2 %1537  ;;  %v1445_v33 = vsel %vm1045_vm3, %v2837_v32, %v2752_v11  ;;  %v1047_v44 = vsel %vm1045_vm3, %v2652_v6, %v2839_v17  ;;  %v3439_v6 = vperm.slane %v2821_v60, 2 }
 0x1c4   : > { %v1448_v18 = vmul.f32 %v1445_v33, %v3482_v1  ;;  %v1056_v42 = vmul.f32 %v3483_v55, %v1047_v44  ;;  %v1501_v33 = vsel %vm1111_vm6, %v2812_v53, %v2796_v45 }
 0x1c6   : > { %v1456_v7 = vmul.f32 %v2491_v15, %v1448_v18  ;;  %v1064_v11 = vmul.f32 %v2616_v59, %v1056_v42  ;;  %v3488_v18 = vperm.slane %v2674_v16, 4 }
 0x1c8   : > { %v1460_v48 = vadd.f32 %v1456_v7, %v1428_v54  ;;  %v1068_v57 = vadd.f32 %v1064_v11, %v1031_v26  ;;  %1541 = vrot.lane.b32.xlu1 %v2705_v27, %s2331_s21  ;;  %v3486_v7 = vperm.slane %v2674_v16, 3  ;;  %s756_s21 = scalar_lea.vmem %s3414_s9, %s2451_s20  ;;  %v1520_v55 = vmul.f32 %v2562_v52, %v3488_v18 }
 0x1c9   : > { %1277 = vperm.xlu2 %2293, %v2476_v10   ;;  %v3487_v10 = vperm.slane %v2674_v16, 2  ;;  %v1000_v45 = vld [vmem:[%s756_s21] sm:$0xf]  ;;  %v3443_v52 = vperm.slane %v2674_v16, 5 }
 0x1ca   : > { %v2867_v31 = vpop.permute.xlu1 %1463  ;;  %v2869_v44 = vpop.permute.xlu0 %1074  ;;  %v1504_v11 = vmul.f32 %v1501_v33, %v3486_v7 }
 0x1cb   : > { %3484 = vst [vmem:[#allocation18_spill] sm:$0xff] %v2867_v31  ;;  %v2871_v3 = vpop.permute.xlu2 %1619  ;;  %v1473_v42 = vsel %vm1078_vm5, %v2867_v31, %v2785_v41  ;;  %v1080_v54 = vsel %vm1078_vm5, %v2664_v12, %v2869_v44 }
 0x1cc   : > { %3485 = vst [vmem:[#allocation19_spill] sm:$0xff] %v2871_v3  ;;  %v1476_v26 = vmul.f32 %v1473_v42, %v3487_v10  ;;  %v1089_v1 = vmul.f32 %v3439_v6, %v1080_v54  ;;  %v1512_v42 = vmul.f32 %v2533_v39, %v1504_v11  ;;  %v3441_v54 = vperm.slane %v2821_v60, 3 }
 0x1cd   : > { %v3489_v6 = vmov 0  }
 0x1ce   : > { %v1484_v3 = vmul.f32 %v2531_v38, %v1476_v26  ;;  %v1097_v12 = vmul.f32 %v2632_v2, %v1089_v1  ;;  %v1528_v26 = vmul.f32 %v2644_v5, %v1520_v55 }
 0x1d0   : > { %v1488_v7 = vadd.f32 %v1484_v3, %v1460_v48  ;;  %v1101_v10 = vadd.f32 %v1097_v12, %v1068_v57  ;;  %1257 = vrot.lane.b32.xlu1 %v2541_v46, %s2334_s28 }
 0x1d1   : > { %2296 = vset.pattern.permute.xlu2 %v3489_v6 }
 0x1d2   : > { %v1516_v18 = vadd.f32 %v1512_v42, %v1488_v7  ;;  %1290 = vperm.xlu2 %2296, %v1000_v45   ;;  %v2904_v1 = vpop.permute.xlu1 %1535  ;;  %v2906_v33 = vpop.permute.xlu0 %1107  ;;  %v3490_v45 = vperm.slane %v2821_v60, 4  ;;  %v3440_v7 = vperm.slane %v2821_v60, 5 }
 0x1d3   : > { %v1161_v48 = vpop.permute.xlu2 %1160  ;;  %v1113_v46 = vsel %vm1111_vm6, %v2690_v22, %v2906_v33 }
 0x1d4   : > { %v1166_v57 = vsel %vm1164_vm7, %v2764_v24, %v1161_v48  ;;  %v1122_v6 = vmul.f32 %v3441_v54, %v1113_v46  ;;  %v1142_v3 = vmul.f32 %v3490_v45, %v2587_v56  ;;  %v2920_v11 = vadd.f32 %v1528_v26, %v1516_v18  ;;  %v1770_v45 = vld [vmem:[%s784_s29] sm:$0xff] }
 0x1d5   : > { %v1174_v55 = vmul.f32 %v3443_v52, %v1166_v57 }
 0x1d6   : > { %v1130_v12 = vmul.f32 %v2630_v0, %v1122_v6  ;;  %v1150_v24 = vmul.f32 %v2543_v47, %v1142_v3  ;;  %v1405_v3 = vld [vmem:[%s772_s18] sm:$0xff] }
 0x1d7   : > { %v1182_v22 = vmul.f32 %v2660_v8, %v1174_v55 }
 0x1d8   : > { %v1134_v42 = vadd.f32 %v1130_v12, %v1101_v10  ;;  %1623 = vrot.lane.b32.xlu1 %v2669_v14, %s2334_s28  ;;  %s3372_s28 = scalar_lea.vmem %s3420_s15, %s2451_s20 }
 0x1d9   : > { %v1186_v46 = vadd.f32 %v1182_v22, %v2756_v23  ;;  %v3442_v22 = vperm.slane %v2674_v16, 6 }
 0x1da   : > { %v2935_v56 = vpop.permute.xlu1 %1563  ;;  %v1154_v26 = vadd.f32 %v1150_v24, %v1134_v42  ;;  %v2937_v18 = vpop.permute.xlu0 %1162  ;;  %1773 = vperm.xlu2 %2296, %v1770_v45  }
 0x1db   : > { %3491 = vst [vmem:[#allocation20_spill] sm:$0xff] %v2935_v56  ;;  %v2943_v10 = vpop.permute.xlu2 %1226  ;;  %v1165_v57 = vsel %vm1164_vm7, %v1161_v48, %v2937_v18 }
 0x1dc   : > { %v2952_v23 = vsel %vm1230_vm8, %v2792_v43, %v2943_v10  ;;  %v1175_v6 = vmul.f32 %v3440_v7, %v1165_v57 }
 0x1de   : > { %v1183_v55 = vmul.f32 %v2660_v8, %v1175_v6 }
 0x1e0   : > { %v2957_v12 = vadd.f32 %v1183_v55, %v1154_v26  ;;  %1649 = vperm.xlu1 %2295, %v1405_v3  }
 0x1e2   : > { %v2961_v48 = vpop.permute.xlu1 %1591  ;;  %v2963_v42 = vpop.permute.xlu0 %1193 }
 0x1e3   : > { %3492 = vst [vmem:[#allocation21_spill] sm:$0xff] %v2961_v48  ;;  %v1411_v43 = vpop.permute.xlu2 %1410  ;;  %v1199_v24 = vsel %vm1197_vm9, %v2722_v35, %v2963_v42 }
 0x1e4   : > { %v2972_v26 = vsel %vm1011_vm4, %v2808_v50, %v1411_v43  ;;  %v1207_v57 = vmul.f32 %v3442_v22, %v1199_v24  ;;  %v1016_v24 = vperm.slane %v2538_v40, 0 }
 0x1e6   : > { %v1215_v6 = vmul.f32 %v2608_v58, %v1207_v57  ;;  %v1050_v57 = vperm.slane %v2538_v40, 1 }
 0x1e8   : > { %v2977_v45 = vadd.f32 %v1215_v6, %v1186_v46 }
 0x1ea   : > { %v2979_v3 = vpop.permute.xlu1 %1593  ;;  %v2981_v55 = vpop.permute.xlu0 %1228 }
 0x1eb   : > { %v1413_v7 = vpop.permute.xlu2 %1412  ;;  %v2987_v54 = vsel %vm1230_vm8, %v2961_v48, %v2979_v3 }
 0x1ec   : > { %3493 = vst [vmem:[#allocation22_spill] sm:$0xff] %v2987_v54  ;;  %v2991_v50 = vsel %vm1011_vm4, %v1411_v43, %v1413_v7  ;;  %v1417_v46 = vsel %vm1011_vm4, %v1413_v7, %v2766_v25  ;;  %v3009_v54 = vld [vmem:[%s3407_s2 + $0x18] sm:$0xff] }
 0x1ed   : > { %v1418_v52 = vmul.f32 %v1417_v46, %v1016_v24  ;;  %v3454_v14 = vperm.slane %v3009_v54, 0  ;;  %v3457_v5 = vperm.slane %v3009_v54, 1 }
 0x1ef   : > { %v1427_v25 = vmul.f32 %v2529_v37, %v1418_v52 }
 0x1f2   : > { %v1008_v6 = vpop.permute.xlu1 %1007  ;;  %v2998_v22 = vpop.permute.xlu0 %1259 }
 0x1f3   : > { %v3000_v27 = vpop.permute.xlu2 %1441  ;;  %v1012_v46 = vsel %vm1011_vm4, %v2810_v51, %v1008_v6 }
 0x1f4   : > { %v1446_v43 = vsel %vm1045_vm3, %v3000_v27, %v2837_v32  ;;  %v1023_v32 = vmul.f32 %v3454_v14, %v1012_v46 }
 0x1f5   : > { %v1447_v48 = vmul.f32 %v1446_v43, %v1050_v57 }
 0x1f7   : > { %v1455_v7 = vmul.f32 %v2491_v15, %v1447_v48 }
 0x1f9   : > { %v3018_v39 = vadd.f32 %v1455_v7, %v1427_v25  ;;  %v1032_v25 = vmul.f32 %v2618_v61, %v1023_v32 }
 0x1fa   : > { %v1044_v43 = vpop.permute.xlu1 %1043  ;;  %v3022_v38 = vpop.permute.xlu0 %1467 }
 0x1fb   : > { %3494 = vst [vmem:[#allocation23_spill] sm:$0xff] %v3018_v39  ;;  %v3024_v56 = vpop.permute.xlu2 %1497  ;;  %v1046_v52 = vsel %vm1045_vm3, %v2839_v17, %v1044_v43  ;;  %v1049_v14 = vsel %vm1045_vm3, %v1044_v43, %v2686_v19  ;;  %v3459_v17 = vperm.slane %v2538_v40, 2  ;;  %v3458_v39 = vperm.slane %v3009_v54, 2 }
 0x1fc   : > { %v3033_v51 = vsel %vm1111_vm6, %v3024_v56, %v2812_v53  ;;  %v1057_v48 = vmul.f32 %v3457_v5, %v1046_v52  ;;  %v1015_v53 = vsel %vm1011_vm4, %v1008_v6, %v2688_v20  ;;  %v1054_v43 = vmul.f32 %v1050_v57, %v1049_v14 }
 0x1fd   : > { %v3460_v20 = vperm.slane %v3009_v54, 4  ;;  %v1020_v6 = vmul.f32 %v1016_v24, %v1015_v53  ;;  %v1169_v14 = vperm.slane %v2538_v40, 5  ;;  %v1200_v57 = vsel %vm1197_vm9, %v2754_v21, %v2722_v35 }
 0x1fe   : > { %v1065_v7 = vmul.f32 %v2616_v59, %v1057_v48  ;;  %v3461_v24 = vperm.slane %v3009_v54, 3  ;;  %v1172_v53 = vperm.slane %v3009_v54, 5 }
 0x1ff   : > { %v1029_v35 = vmul.f32 %v2618_v61, %v1020_v6  ;;  %v1236_v6 = vperm.slane %v2674_v16, 7 }
 0x200   : > { %v1069_v46 = vadd.f32 %v1065_v7, %v1032_v25  ;;  %v3495_v25 = vperm.slane %v2674_v16, 5 }
 0x202   : > { %v1077_v41 = vpop.permute.xlu1 %1076  ;;  %v3044_v31 = vpop.permute.xlu0 %1569 }
 0x203   : > { %v3049_v52 = vpop.permute.xlu2 %1539  ;;  %v1079_v32 = vsel %vm1078_vm5, %v2869_v44, %v1077_v41  ;;  %v1082_v19 = vsel %vm1078_vm5, %v1077_v41, %v2720_v34  ;;  %v3462_v34 = vperm.slane %v2538_v40, 6 }
 0x204   : > { %v1544_v48 = vsel %vm1164_vm7, %v2841_v63, %v3049_v52  ;;  %v1087_v5 = vmul.f32 %v3459_v17, %v1082_v19  ;;  %v1090_v44 = vmul.f32 %v3458_v39, %v1079_v32  ;;  %v1116_v19 = vperm.slane %v2538_v40, 3 }
 0x205   : > { %v1548_v7 = vmul.f32 %v1544_v48, %v3495_v25  ;;  %v1062_v48 = vmul.f32 %v2616_v59, %v1054_v43  ;;  %v1143_v25 = vmul.f32 %v3460_v20, %v2620_v62  ;;  %v1173_v62 = vmul.f32 %v1169_v14, %v2774_v28 }
 0x206   : > { %v1095_v59 = vmul.f32 %v2632_v2, %v1087_v5  ;;  %v1098_v43 = vmul.f32 %v2632_v2, %v1090_v44  ;;  %v1235_v20 = vperm.slane %v2538_v40, 7 }
 0x207   : > { %v1556_v41 = vmul.f32 %v2642_v4, %v1548_v7  ;;  %v1168_v7 = vsel %vm1164_vm7, %v2937_v18, %v2750_v9  ;;  %v1066_v5 = vadd.f32 %v1062_v48, %v1029_v35  ;;  %v1151_v44 = vmul.f32 %v2543_v47, %v1143_v25 }
 0x209   : > { %v1560_v32 = vadd.f32 %v1556_v41, %v2920_v11  ;;  %v1206_v11 = vmul.f32 %v3462_v34, %v1200_v57  ;;  %v1237_v34 = vperm.slane %v2821_v60, 7 }
 0x20a   : > { %v1110_v39 = vpop.permute.xlu1 %1109  ;;  %v3090_v17 = vpop.permute.xlu0 %1597 }
 0x20b   : > { %v3097_v41 = vpop.permute.xlu2 %1567  ;;  %v1112_v61 = vsel %vm1111_vm6, %v2906_v33, %v1110_v39  ;;  %v1115_v2 = vsel %vm1111_vm6, %v1110_v39, %v2724_v36  ;;  %v1176_v33 = vmul.f32 %v1172_v53, %v1168_v7  ;;  %v1099_v39 = vadd.f32 %v1095_v59, %v1066_v5 }
 0x20c   : > { %v1572_v9 = vsel %vm1197_vm9, %v2783_v30, %v3097_v41  ;;  %v1120_v18 = vmul.f32 %v1116_v19, %v1115_v2  ;;  %v1123_v28 = vmul.f32 %v3461_v24, %v1112_v61  ;;  %v1102_v36 = vadd.f32 %v1098_v43, %v1069_v46 }
 0x20d   : > { %v1214_v35 = vmul.f32 %v2608_v58, %v1206_v11  ;;  %v1181_v2 = vmul.f32 %v2660_v8, %v1173_v62  ;;  %v3496_v61 = vperm.slane %v2674_v16, 6  ;;  %v1238_v7 = vperm.slane %v3009_v54, 7 }
 0x20e   : > { %v1128_v57 = vmul.f32 %v2630_v0, %v1120_v18  ;;  %v1131_v48 = vmul.f32 %v2630_v0, %v1123_v28  ;;  %v1240_v46 = vmul.f32 %v1236_v6, %v2952_v23  ;;  %v1184_v59 = vmul.f32 %v2660_v8, %v1176_v33  ;;  %v3497_v8 = vld [vmem:[#allocation6_spill] sm:$0xff] }
 0x20f   : > { %v1576_v24 = vmul.f32 %v1572_v9, %v3496_v61  ;;  %v1205_v0 = vperm.slane %v3009_v54, 6  ;;  %v1204_v43 = vperm.slane %v2821_v60, 6  ;;  %v1231_v16 = vsel %vm1230_vm8, %v2943_v10, %v2981_v55 }
 0x210   : > { %v1132_v47 = vadd.f32 %v1128_v57, %v1099_v39  ;;  %v1135_v25 = vadd.f32 %v1131_v48, %v1102_v36  ;;  %v1234_v11 = vsel %vm1230_vm8, %v2981_v55, %v2781_v29  ;;  %v3498_v36 = vld [vmem:[#allocation17_spill] sm:$0xff] }
 0x211   : > { %v1584_v18 = vmul.f32 %v3497_v8, %v1576_v24  ;;  %v1242_v48 = vmul.f32 %v1238_v7, %v1234_v11 }
 0x212   : > { %v1152_v62 = vadd.f32 %v2552_v49, %v1132_v47  ;;  %v1155_v5 = vadd.f32 %v1151_v44, %v1135_v25  ;;  %v1196_v23 = vpop.permute.xlu1 %1195  ;;  %v1245_v9 = vpop.permute.xlu0 %1244  ;;  %v1239_v49 = vmul.f32 %v1235_v20, %v3498_v36  ;;  %v1241_v44 = vmul.f32 %v1237_v34, %v1231_v16  ;;  %v3499_v25 = vld [vmem:[#allocation9_spill] sm:$0xff] }
 0x213   : > { %v3140_v28 = vpop.permute.xlu2 %1595  ;;  %v1198_v33 = vsel %vm1197_vm9, %v2963_v42, %v1196_v23  ;;  %v1201_v10 = vsel %vm1197_vm9, %v1196_v23, %v2754_v21  ;;  %v1248_v39 = vmul.f32 %v1245_v9, %v1240_v46  ;;  %v3501_v36 = vld [vmem:[#allocation13_spill] sm:$0xff] }
 0x214   : > { %v1185_v29 = vadd.f32 %v1181_v2, %v1152_v62  ;;  %v1600_v55 = vsel %vm1230_vm8, %v2979_v3, %v3140_v28  ;;  %v1188_v24 = vadd.f32 %v1184_v59, %v1155_v5  ;;  %v1208_v57 = vmul.f32 %v1204_v43, %v1198_v33 }
 0x215   : > { %v1604_v42 = vmul.f32 %v1600_v55, %v1236_v6  ;;  %v1209_v21 = vmul.f32 %v1205_v0, %v1201_v10  ;;  %v1247_v61 = vmul.f32 %v1245_v9, %v1239_v49  ;;  %v3164_v47 = vadd.f32 %v1248_v39, %v2977_v45 }
 0x216   : > { %v1218_v2 = vadd.f32 %v1214_v35, %v1185_v29  ;;  %v1588_v3 = vadd.f32 %v1584_v18, %v1560_v32  ;;  %v1216_v59 = vmul.f32 %v2608_v58, %v1208_v57  ;;  %v1249_v16 = vmul.f32 %v1245_v9, %v1241_v44  ;;  %v3185_v32 = vld [vmem:[%s3407_s2 + $0x30] ss:$0 sm:$0xff] }
 0x217   : > { %v1612_v46 = vmul.f32 %v3499_v25, %v1604_v42  ;;  %v1217_v6 = vmul.f32 %v2608_v58, %v1209_v21  ;;  %v1250_v35 = vmul.f32 %v1245_v9, %v1242_v48  ;;  %v3180_v58 = vld [vmem:[%s3407_s2 + $0x38] ss:$0 sm:$0xff]  ;;  %v3502_v44 = vperm.slane %v3009_v54, 1  ;;  %v3503_v48 = vld [vmem:[#allocation12_spill] sm:$0xff] }
 0x218   : > { %v3169_v62 = vadd.f32 %v1247_v61, %v1218_v2  ;;  %v1220_v23 = vadd.f32 %v1216_v59, %v2957_v12  ;;  %v3500_v12 = vperm.slane %v3009_v54, 0  ;;  %v3504_v59 = vperm.slane %v2821_v60, 1 }
 0x219   : > { %v3171_v5 = vadd.f32 %v1612_v46, %v1588_v3  ;;  %v1221_v11 = vadd.f32 %v1217_v6, %v1188_v24 }
 0x21a   : > { %v1262_v33 = vpop.permute.xlu1 %1261  ;;  %v1253_v10 = vadd.f32 %v1249_v16, %v1220_v23  ;;  %v1421_v9 = vmul.f32 %v2991_v50, %v3500_v12  ;;  %v1545_v16 = vsel %vm1164_vm7, %v2904_v1, %v2841_v63  ;;  %v3505_v23 = vperm.slane %v2821_v60, 0  ;;  %v3506_v12 = vld [vmem:[#allocation18_spill] sm:$0xff] }
 0x21b   : > { %v1254_v45 = vadd.f32 %v1250_v35, %v1221_v11  ;;  %v3174_v39 = vpop.permute.xlu2 %1625  ;;  %v1264_v18 = vsel %vm1263_vm10, %v2998_v22, %v1262_v33  ;;  %v1267_v49 = vsel %vm1263_vm10, %v1262_v33, %v3501_v36  ;;  %v3507_v63 = vld [vmem:[#allocation14_spill] sm:$0xff] }
 0x21c   : > { %v1274_v50 = vmul.f32 %v3185_v32, %v1264_v18  ;;  %v1275_v57 = vmul.f32 %v3180_v58, %v1267_v49  ;;  %v1430_v21 = vmul.f32 %v2529_v37, %v1421_v9  ;;  %v1420_v11 = vmul.f32 %v2972_v26, %v3505_v23 }
 0x21d   : > { %v1472_v26 = vsel %vm1078_vm5, %v3507_v63, %v3022_v38 }
 0x222   : > { %v1440_v29 = vpop.permute.xlu1 %1439 }
 0x223   : > { %v3196_v55 = vpop.permute.xlu2 %1277  ;;  %v1443_v24 = vsel %vm1045_vm3, %v1440_v29, %v3000_v27  ;;  %v1444_v2 = vsel %vm1045_vm3, %v3503_v48, %v1440_v29  ;;  %v1503_v29 = vmul.f32 %v3033_v51, %v1116_v19  ;;  %v1547_v19 = vmul.f32 %v1545_v16, %v1169_v14  ;;  %v3516_v14 = vld [vmem:[#allocation23_spill] sm:$0xff] }
 0x224   : > { %v1450_v42 = vmul.f32 %v1443_v24, %v3502_v44  ;;  %v1282_v3 = vmul.f32 %v3196_v55, %v1274_v50  ;;  %v1283_v46 = vmul.f32 %v3196_v55, %v1275_v57  ;;  %v1449_v6 = vmul.f32 %v1444_v2, %v3504_v59  ;;  %v3510_v57 = vld [vmem:[#allocation5_spill] sm:$0xff] }
 0x225   : > { %v3508_v24 = vperm.slane %v2538_v40, 2  ;;  %v3509_v50 = vperm.slane %v2538_v40, 4  ;;  %v3512_v2 = vperm.slane %v3009_v54, 2  ;;  %v1429_v59 = vmul.f32 %v2529_v37, %v1420_v11 }
 0x226   : > { %v1458_v61 = vmul.f32 %v2491_v15, %v1450_v42  ;;  %v1286_v18 = vadd.f32 %v1282_v3, %v1253_v10  ;;  %v1287_v49 = vadd.f32 %v1283_v46, %v1254_v45  ;;  %v1457_v10 = vmul.f32 %v2491_v15, %v1449_v6  ;;  %v3513_v3 = vld [vmem:[#allocation3_spill] sm:$0xff] }
 0x227   : > { %v3514_v15 = vperm.slane %v2821_v60, 2  ;;  %v3519_v11 = vperm.slane %v2821_v60, 4 }
 0x228   : > { %v1462_v27 = vadd.f32 %v1458_v61, %v1430_v21  ;;  %v1519_v21 = vmul.f32 %v3510_v57, %v3509_v50  ;;  %v3522_v57 = vld [vmem:[#allocation11_spill] sm:$0xff] }
 0x229   : > { %v1477_v6 = vmul.f32 %v1472_v26, %v3514_v15  ;;  %v3520_v26 = vld [vmem:[#allocation10_spill] sm:$0xff]  ;;  %v3525_v15 = vperm.slane %v2821_v60, 3 }
 0x22a   : > { %v1470_v35 = vpop.permute.xlu1 %1469  ;;  %v1521_v50 = vmul.f32 %v3520_v26, %v3519_v11  ;;  %v3527_v26 = vld [vmem:[#allocation21_spill] sm:$0xff] }
 0x22b   : > { %v1471_v33 = vsel %vm1078_vm5, %v3022_v38, %v1470_v35  ;;  %v1474_v9 = vsel %vm1078_vm5, %v1470_v35, %v3506_v12  ;;  %v3511_v38 = vld [vmem:[#allocation20_spill] sm:$0xff] }
 0x22c   : > { %v1475_v44 = vmul.f32 %v1474_v9, %v3508_v24  ;;  %v3236_v42 = vpop.permute.xlu2 %1290  ;;  %v1573_v48 = vsel %vm1197_vm9, %v3511_v38, %v2783_v30  ;;  %v1478_v61 = vmul.f32 %v1471_v33, %v3512_v2  ;;  %v3515_v12 = vld [vmem:[#allocation4_spill] sm:$0xff]  ;;  %v3518_v30 = vperm.slane %v2538_v40, 6 }
 0x22d   : > { %v1295_v45 = vadd.f32 %v3236_v42, %v1286_v18  ;;  %v1296_v51 = vadd.f32 %v3236_v42, %v1287_v49  ;;  %v1511_v9 = vmul.f32 %v3515_v12, %v1503_v29  ;;  %v3517_v18 = vld [vmem:[#allocation8_spill] sm:$0xff]  ;;  %v1461_v24 = vadd.f32 %v1457_v10, %v1429_v59 }
 0x22e   : > { %v1483_v46 = vmul.f32 %v3513_v3, %v1475_v44  ;;  %v1527_v49 = vmul.f32 %v3517_v18, %v1519_v21  ;;  %v1575_v63 = vmul.f32 %v1573_v48, %v3518_v30  ;;  %v1486_v33 = vmul.f32 %v3513_v3, %v1478_v61  ;;  %v3523_v48 = vld [vmem:[#allocation16_spill] sm:$0xff]  ;;  %v3524_v61 = vld [vmem:[#allocation22_spill] sm:$0xff] }
 0x22f   : > { %v1672_v23 = vrot.slane %v1295_v45, 4  ;;  %v1673_v35 = vrot.slane %v1296_v51, 4  ;;  %v3521_v29 = vperm.slane %v3009_v54, 4  ;;  %v1555_v21 = vmul.f32 %v2642_v4, %v1547_v19 }
 0x230   : > { %v1487_v16 = vadd.f32 %v1483_v46, %v3516_v14  ;;  %v1485_v51 = vmul.f32 %v3513_v3, %v1477_v6  ;;  %v1603_v46 = vmul.f32 %v3524_v61, %v1235_v20  ;;  %v3526_v19 = vperm.slane %v3009_v54, 3  ;;  %v2298_v54 = vld [vmem:[%s3407_s2 + $0x20] ss:$0 sm:$0xff] }
 0x231   : > { %1676 = vst [vmem:[#allocation2 + $0x28] sm:$0xf0] %v1672_v23  ;;  %v1522_v45 = vmul.f32 %v3522_v57, %v3521_v29  ;;  %v1583_v3 = vmul.f32 %v3497_v8, %v1575_v63  ;;  %v1529_v40 = vmul.f32 %v3517_v18, %v1521_v50  ;;  %v1574_v63 = vsel %vm1197_vm9, %v3044_v31, %v3511_v38 }
 0x232   : > { %v1515_v44 = vadd.f32 %v1511_v9, %v1487_v16  ;;  %1677 = vst [vmem:[#allocation2 + $0x10] sm:$0xf0] %v1673_v35  ;;  %v1496_v37 = vpop.permute.xlu1 %1495  ;;  %v1489_v6 = vadd.f32 %v1485_v51, %v1461_v24  ;;  %v1490_v9 = vadd.f32 %v1486_v33, %v1462_v27  ;;  %v1578_v38 = vmul.f32 %v1574_v63, %v1205_v0 }
 0x233   : > { %v1499_v10 = vsel %vm1111_vm6, %v1496_v37, %v3024_v56  ;;  %v1500_v2 = vsel %vm1111_vm6, %v3523_v48, %v1496_v37  ;;  %v1530_v20 = vmul.f32 %v3517_v18, %v1522_v45  ;;  %v3528_v29 = vperm.slane %v2821_v60, 5 }
 0x234   : > { %v1531_v59 = vadd.f32 %v1527_v49, %v1515_v44  ;;  %v1505_v23 = vmul.f32 %v1500_v2, %v3525_v15  ;;  %v1506_v35 = vmul.f32 %v1499_v10, %v3526_v19  ;;  %v1611_v49 = vmul.f32 %v3499_v25, %v1603_v46 }
 0x235   : > { %v1586_v10 = vmul.f32 %v3497_v8, %v1578_v38 }
 0x236   : > { %v1559_v56 = vadd.f32 %v1555_v21, %v1531_v59  ;;  %v1513_v14 = vmul.f32 %v3515_v12, %v1505_v23  ;;  %v1514_v16 = vmul.f32 %v3515_v12, %v1506_v35  ;;  %v1602_v12 = vsel %vm1230_vm8, %v3090_v17, %v3527_v26  ;;  %v3529_v35 = vld [vmem:[#allocation15_spill] sm:$0xff] }
 0x237   : > { %v1606_v21 = vmul.f32 %v1602_v12, %v1238_v7  ;;  %v1599_v23 = vsel %vm1230_vm8, %v3140_v28, %v3090_v17 }
 0x238   : > { %v1517_v30 = vadd.f32 %v1513_v14, %v1489_v6  ;;  %v1518_v44 = vadd.f32 %v1514_v16, %v1490_v9  ;;  %v1587_v37 = vadd.f32 %v1583_v3, %v1559_v56  ;;  %v3530_v3 = vld [vmem:[#allocation19_spill] sm:$0xff] }
 0x239   : > { %v1614_v7 = vmul.f32 %v3499_v25, %v1606_v21  ;;  %v1630_v9 = vsel %vm1263_vm10, %v3174_v39, %v3530_v3 }
 0x23a   : > { %v1542_v27 = vpop.permute.xlu1 %1541  ;;  %v1533_v24 = vadd.f32 %v1529_v40, %v1517_v30  ;;  %v1534_v33 = vadd.f32 %v1530_v20, %v1518_v44  ;;  %v1615_v11 = vadd.f32 %v1611_v49, %v1587_v37  ;;  %v3531_v49 = vld [vmem:[#allocation7_spill] sm:$0xff] }
 0x23b   : > { %v1543_v18 = vsel %vm1164_vm7, %v3049_v52, %v1542_v27  ;;  %v1546_v50 = vsel %vm1164_vm7, %v1542_v27, %v2904_v1  ;;  %v1571_v1 = vsel %vm1197_vm9, %v3097_v41, %v3044_v31 }
 0x23c   : > { %v1549_v57 = vmul.f32 %v1543_v18, %v3528_v29  ;;  %v1550_v45 = vmul.f32 %v1546_v50, %v1172_v53  ;;  %v2301_v53 = vld [vmem:[%s3407_s2 + $0x28] ss:$0 sm:$0xff]  ;;  %v1577_v61 = vmul.f32 %v1571_v1, %v1204_v43 }
 0x23e   : > { %v1557_v51 = vmul.f32 %v2642_v4, %v1549_v57  ;;  %v1558_v52 = vmul.f32 %v2642_v4, %v1550_v45  ;;  %v1585_v6 = vmul.f32 %v3497_v8, %v1577_v61  ;;  %v1634_v8 = vmul.f32 %v3180_v58, %v1630_v9 }
 0x240   : > { %v1561_v0 = vadd.f32 %v1557_v51, %v1533_v24  ;;  %v1562_v48 = vadd.f32 %v1558_v52, %v1534_v33 }
 0x242   : > { %v1590_v4 = vadd.f32 %v1586_v10, %v1562_v48  ;;  %v1258_v2 = vpop.permute.xlu1 %1257 }
 0x243   : > { %v1265_v31 = vsel %vm1263_vm10, %v1258_v2, %v2998_v22  ;;  %v1266_v41 = vsel %vm1263_vm10, %v3501_v36, %v1258_v2  ;;  %v1629_v22 = vsel %vm1263_vm10, %v3530_v3, %v3529_v35  ;;  %v1605_v36 = vmul.f32 %v1599_v23, %v1237_v34 }
 0x244   : > { %v1272_v46 = vmul.f32 %v2298_v54, %v1266_v41  ;;  %v1273_v59 = vmul.f32 %v2301_v53, %v1265_v31  ;;  %v1618_v15 = vadd.f32 %v1614_v7, %v1590_v4  ;;  %v1631_v40 = vmul.f32 %v2298_v54, %v1629_v22 }
 0x246   : > { %v1280_v19 = vmul.f32 %v3196_v55, %v1272_v46  ;;  %v1281_v43 = vmul.f32 %v3196_v55, %v1273_v59  ;;  %v1589_v55 = vadd.f32 %v1585_v6, %v1561_v0  ;;  %v1639_v44 = vmul.f32 %v3531_v49, %v1631_v40 }
 0x248   : > { %v1284_v17 = vadd.f32 %v1280_v19, %v3169_v62  ;;  %v1285_v28 = vadd.f32 %v1281_v43, %v3164_v47  ;;  %v1613_v62 = vmul.f32 %v3499_v25, %v1605_v36  ;;  %v1643_v63 = vadd.f32 %v1639_v44, %v1615_v11 }
 0x24a   : > { %v1293_v56 = vadd.f32 %v3236_v42, %v1284_v17  ;;  %v1294_v14 = vadd.f32 %v3236_v42, %v1285_v28  ;;  %v1624_v16 = vpop.permute.xlu1 %1623  ;;  %v1617_v42 = vadd.f32 %v1613_v62, %v1589_v55 }
 0x24b   : > { %v1627_v60 = vsel %vm1263_vm10, %v1624_v16, %v3174_v39  ;;  %v1628_v34 = vsel %vm1263_vm10, %v3529_v35, %v1624_v16  ;;  %v1642_v39 = vmul.f32 %v3531_v49, %v1634_v8  ;;  %v1774_v8 = vpop.permute.xlu2 %1773 }
 0x24c   : > { %1656 = vst [vmem:[#allocation2 + $0x28] sm:$0xf] %v1293_v56  ;;  %v1632_v47 = vmul.f32 %v2301_v53, %v1628_v34  ;;  %v1633_v20 = vmul.f32 %v3185_v32, %v1627_v60  ;;  %v1848_v53 = vld [vmem:[%s3372_s28] sm:$0xf] }
 0x24d   : > { %1657 = vst [vmem:[#allocation2 + $0x10] sm:$0xf] %v1294_v14  ;;  %v1646_v27 = vadd.f32 %v1642_v39, %v1618_v15  ;;  %v1777_v56 = vld [vmem:[%s3408_s3] sm:$0xff] }
 0x24e   : > { %v1640_v30 = vmul.f32 %v3531_v49, %v1632_v47  ;;  %v1641_v58 = vmul.f32 %v3531_v49, %v1633_v20  ;;  %vm1778_vm4 = vcmp.gt.f32.partialorder %v1777_v56, 0.0  ;;  %v1910_v47 = vld [vmem:[%s3372_s28] sm:$0xf] }
 0x250   : > { %v1644_v37 = vadd.f32 %v1640_v30, %v3171_v5  ;;  %v1645_v13 = vadd.f32 %v1641_v58, %v1617_v42 }
 0x252   : > { %v1650_v25 = vpop.permute.xlu1 %1649 }
 0x253   : > { %v1652_v24 = vadd.f32 %v1650_v25, %v1643_v63  ;;  %v1653_v33 = vadd.f32 %v1650_v25, %v1644_v37  ;;  %v1654_v26 = vadd.f32 %v1650_v25, %v1645_v13  ;;  %v1655_v32 = vadd.f32 %v1650_v25, %v1646_v27  ;;  %v1688_v12 = vld [vmem:[#allocation2 + $0x28] sm:$0xff] }
 0x254   : > { %v1689_v18 = vld [vmem:[#allocation2 + $0x10] sm:$0xff]  ;;  %v1694_v50 = vmul.f32 %v1688_v12, %v1688_v12 }
 0x255   : > { %1659 = vst [vmem:[#allocation2 + $0x8] sm:$0xf] %v1652_v24  ;;  %v1663_v38 = vrot.slane %v1652_v24, 4  ;;  %v1664_v29 = vrot.slane %v1653_v33, 4  ;;  %v1680_v57 = vrot.slane %v1654_v26, 4  ;;  %v1681_v45 = vrot.slane %v1655_v32, 4 }
 0x256   : > { %1660 = vst [vmem:[#allocation2] sm:$0xf] %v1653_v33  ;;  %v1695_v21 = vmul.f32 %v1689_v18, %v1689_v18 }
 0x257   : > { %1668 = vst [vmem:[#allocation2 + $0x18] sm:$0xf] %v1663_v38 }
 0x258   : > { %1669 = vst [vmem:[#allocation2 + $0x20] sm:$0xf] %v1664_v29  ;;  %v1696_v5 = vadd.f32 %v1695_v21, %v1694_v50 }
 0x259   : > { %1684 = vst [vmem:[#allocation2 + $0x8] sm:$0xf0] %v1680_v57 }
 0x25a   : > { %1685 = vst [vmem:[#allocation2] sm:$0xf0] %v1681_v45  ;;  %1697 = vadd.xlane.f32.xlu1 %v1696_v5  ;;  %v1909_v45 = vld [vmem:[%s776_s27] sm:$0xf] }
 0x25b   : > { %1686 = vst [vmem:[#allocation2 + $0x18] sm:$0xf0] %v1654_v26 }
 0x25c   : > { %1687 = vst [vmem:[#allocation2 + $0x20] sm:$0xf0] %v1655_v32 }
 0x260   : > { %v1690_v11 = vld [vmem:[#allocation2 + $0x8] sm:$0xff] }
 0x261   : > { %v1691_v51 = vld [vmem:[#allocation2] sm:$0xff]  ;;  %v1712_v52 = vmul.f32 %v1690_v11, %v1690_v11 }
 0x262   : > { %v1692_v10 = vld [vmem:[#allocation2 + $0x18] sm:$0xff]  ;;  %v1713_v1 = vmul.f32 %v1691_v51, %v1691_v51 }
 0x263   : > { %1822 = vmatpush.msrb.mxu2 %v1692_v10  ;;  %v1693_v0 = vld [vmem:[#allocation2 + $0x20] sm:$0xff] }
 0x264   : > { %1842 = vmatpush.msrb.mxu3 %v1693_v0  ;;  %v1714_v48 = vadd.f32 %v1713_v1, %v1712_v52 }
 0x266   : > { %1715 = vadd.xlane.f32.xlu0 %v1714_v48 }
 0x273   : > { %1851 = vperm.xlu1 %2295, %v1848_v53  }
 0x2cd   : > { %v1698_v54 = vpop.xlane.xlu1 %1697 }
 0x2ce   : > { %v1699_v7 = vmax.f32 %v1698_v54, 1e-24 }
 0x2d0   : > { %2302 = vrsqrt.f32 %v1699_v7  ;;  %vm1706_vm14 = vweird.f32 %v1699_v7 }
 0x2d6   : > { %v2303_v4 = vpop.eup %2302 }
 0x2d7   : > { %v1701_v61 = vmul.f32 %v2303_v4, %v1699_v7  ;;  %vm1707_vm12 = vweird.f32 %v2303_v4 }
 0x2d8   : > { %vm1708_vm3 = vmor %vm1706_vm14, %vm1707_vm12 }
 0x2d9   : > { %v1716_v2 = vpop.xlane.xlu0 %1715  ;;  %v1702_v41 = vmul.f32 %v2303_v4, %v1701_v61 }
 0x2da   : > { %v1717_v31 = vmax.f32 %v1716_v2, 1e-24 }
 0x2db   : > { %v1703_v59 = vmul.f32 0.5, %v1702_v41 }
 0x2dc   : > { %2304 = vrsqrt.f32 %v1717_v31  ;;  %vm1724_vm13 = vweird.f32 %v1717_v31 }
 0x2dd   : > { %v1704_v19 = vsub.f32 1.5, %v1703_v59 }
 0x2df   : > { %v1705_v3 = vmul.f32 %v2303_v4, %v1704_v19 }
 0x2e1   : > { %v1709_v36 = vsel %vm1708_vm3, %v2303_v4, %v1705_v3 }
 0x2e2   : > { %v2305_v46 = vpop.eup %2304  ;;  %v1710_v28 = vmul.f32 %v1709_v36, %v1688_v12  ;;  %v1711_v55 = vmul.f32 %v1709_v36, %v1689_v18  ;;  %v1847_v18 = vld [vmem:[%s776_s27] sm:$0xf] }
 0x2e3   : > { %v1719_v15 = vmul.f32 %v2305_v46, %v1717_v31  ;;  %vm1725_vm11 = vweird.f32 %v2305_v46 }
 0x2e4   : > { %vm1726_vm15 = vmor %vm1724_vm13, %vm1725_vm11 }
 0x2e5   : > { %v1720_v23 = vmul.f32 %v2305_v46, %v1719_v15  ;;  %v1852_v21 = vpop.permute.xlu1 %1851 }
 0x2e7   : > { %v1721_v43 = vmul.f32 0.5, %v1720_v23 }
 0x2e9   : > { %v1722_v35 = vsub.f32 1.5, %v1721_v43 }
 0x2eb   : > { %v1723_v22 = vmul.f32 %v2305_v46, %v1722_v35 }
 0x2ed   : > { %v1727_v6 = vsel %vm1726_vm15, %v2305_v46, %v1723_v22 }
 0x2ee   : > { %v1728_v9 = vmul.f32 %v1727_v6, %v1690_v11  ;;  %v1729_v17 = vmul.f32 %v1727_v6, %v1691_v51 }
 0x2f0   : > { %1745 = vmatpush.xpose.msrb.mxu0 %v1728_v9  ;;  %1765 = vmatpush.xpose.msrb.mxu1 %v1729_v17 }
 0x2f3   : > { %1746 = vmatmul.f32.vlgmr.msrb.gmra.mxu0 %v1710_v28  ;;  %1766 = vmatmul.f32.vlgmr.msrb.gmra.mxu1 %v1711_v55 }
 0x370   : > { %v1747_v14 = vpop.f32.mrf.mxu0  ;;  %v1767_v16 = vpop.f32.mrf.mxu1 }
 0x371   : > { %v1768_v40 = vadd.f32 %v1767_v16, %v1747_v14 }
 0x373   : > { %v1776_v60 = vmul.f32 %v1774_v8, %v1768_v40 }
 0x375   : > { %v1779_v34 = vsel %vm1778_vm4, %v1776_v60, -1e+30 }
 0x376   : > { %v1780_v62 = vsel %vm811_vm0, %v1779_v34, -inf }
 0x377   : > { %1781 = vmax.xlane.f32.xlu2 %v1780_v62 }
 0x38f   : > { %1913 = vperm.xlu2 %2296, %v1910_v47  }
 0x3ea   : > { %v1782_v20 = vpop.xlane.xlu2 %1781 }
 0x3eb   : > { %v1783_v42 = vsub.f32 %v1779_v34, %v1782_v20 }
 0x3ed   : > { %v1784_v49 = vmul.f32 1.442695, %v1783_v42 }
 0x3ef   : > { %2306 = vpow2.f32 %v1784_v49 }
 0x3f2   : > { %v1914_v0 = vpop.permute.xlu2 %1913 }
 0x3f5   : > { %v2307_v30 = vpop.eup %2306 }
 0x3f6   : > { %v1786_v58 = vsel %vm811_vm0, %v2307_v30, 0.0 }
 0x3f7   : > { %1787 = vadd.xlane.f32.xlu0 %v1786_v58 }
 0x46a   : > { %v1788_v44 = vpop.xlane.xlu0 %1787 }
 0x46b   : > { %2308 = vrcp.f32 %v1788_v44  ;;  %v1800_v63 = vand.u32 2147483648, %v1788_v44  ;;  %v1798_v25 = vand.u32 2147483647, %v1788_v44  ;;  %vm1794_vm6 = vweird.f32 %v1788_v44 }
 0x46d   : > { %v1801_v33 = vor.u32 1.1754944e-38, %v1800_v63  ;;  %vm1799_vm8 = vcmp.eq.f32.partialorder %v1798_v25, 8.507059e+37 }
 0x471   : > { %v2309_v39 = vpop.eup %2308 }
 0x472   : > { %v1790_v37 = vmul.f32 %v2309_v39, %v1788_v44  ;;  %vm1795_vm5 = vweird.f32 %v2309_v39 }
 0x473   : > { %vm1796_vm7 = vmor %vm1794_vm6, %vm1795_vm5 }
 0x474   : > { %v1791_v13 = vsub.f32 1.0, %v1790_v37 }
 0x476   : > { %v1792_v27 = vmul.f32 %v2309_v39, %v1791_v13 }
 0x478   : > { %v1793_v24 = vadd.f32 %v2309_v39, %v1792_v27 }
 0x47a   : > { %v1797_v26 = vsel %vm1796_vm7, %v2309_v39, %v1793_v24 }
 0x47b   : > { %v1802_v32 = vsel %vm1799_vm8, %v1801_v33, %v1797_v26 }
 0x47c   : > { %v1803_v12 = vmul.f32 %v2307_v30, %v1802_v32 }
 0x47e   : > { %2238 = vmatmul.msk.f32.vlgmr.msrb.gmra.mxu2 %vm811_vm0, %v1803_v12  ;;  %2239 = vmatmul.msk.f32.vlgmr.msrb.gmra.mxu3 %vm811_vm0, %v1803_v12 }
 0x501   : > { %v1824_v50 = vpop.f32.mrf.mxu2  ;;  %v1844_v38 = vpop.f32.mrf.mxu3 }
 0x502   : > { %v1916_v29 = vrot.slane %v1824_v50, 4  ;;  %v1917_v57 = vrot.slane %v1844_v38, 4  ;;  %2240 = vmatpush.msk.msra.mxu0 %vm906_vm1, %v1824_v50  ;;  %2242 = vmatpush.msk.msra.mxu1 %vm906_vm1, %v1844_v38 }
 0x503   : > { %2241 = vmatmul.msk.f32.vlgmr.msra.gmra.mxu0 %vm902_vm2, %v1847_v18  ;;  %2243 = vmatmul.msk.f32.vlgmr.msra.gmra.mxu1 %vm902_vm2, %v1847_v18 }
 0x504   : > { %2244 = vmatpush.msk.msra.mxu2 %vm906_vm1, %v1916_v29  ;;  %2246 = vmatpush.msk.msra.mxu3 %vm906_vm1, %v1917_v57 }
 0x505   : > { %2245 = vmatmul.msk.f32.vlgmr.msra.gmra.mxu2 %vm902_vm2, %v1909_v45  ;;  %2247 = vmatmul.msk.f32.vlgmr.msra.gmra.mxu3 %vm902_vm2, %v1909_v45 }
 0x580   : > { %v1880_v5 = vpop.f32.mrf.mxu0  ;;  %v1900_v11 = vpop.f32.mrf.mxu1 }
 0x581   : > { %v1901_v51 = vadd.f32 %v1900_v11, %v1852_v21  ;;  %v1881_v52 = vadd.f32 %v1880_v5, %v1852_v21 }
 0x583   : > { %v1905_v10 = vrot.slane %v1901_v51, 4 }
 0x585   : > { %v1906_v1 = vsel %vm906_vm1, %v1881_v52, %v1905_v10 }
 0x586   : > { %1908 = vst [vmem:[%s789_s0] sm:$0xff] %v1906_v1 }
 0x588   : > { %v1942_v48 = vpop.f32.mrf.mxu2  ;;  %v1962_v53 = vpop.f32.mrf.mxu3 }
 0x589   : > { %v1963_v54 = vadd.f32 %v1962_v53, %v1914_v0  ;;  %v1943_v7 = vadd.f32 %v1942_v48, %v1914_v0 }
 0x58b   : > { %v1967_v4 = vrot.slane %v1963_v54, 4 }
 0x58d   : > { %v1968_v2 = vsel %vm906_vm1, %v1943_v7, %v1967_v4 }
 0x58e   : > { %1970 = vst [vmem:[%s789_s0 + $0x8] sm:$0xff] %v1968_v2 }
 0x58f PF: > { %s27_s24 = sadd.s32 1, %s2316_s24  }
 0x590   : > { %p24_p4 = scmp.ge.s32.totalorder %s27_s24, 4  }
 0x592   :  { %26 = sbr.rel (!%p24_p4) target bundleno = 3 (0x3), region = 163 }

</bundles_post_ra>
